<compile_context>
chip_gen: v7x
topology: tpu7x:2x2x1
jax: 0.10.0
libtpu: 0.0.40
codegen_flags: <defaults>
</compile_context>

<pallas_src>
import math

import jax
import jax.numpy as jnp
from jax.experimental import pallas as pl
from jax.experimental.pallas import tpu as pltpu

# ----- small, module-consistent config -----
BATCH = 2
SEQ = 8            # num_timesteps
NUM_LEADS = 12
D_MODEL = 32
NHEAD = 4
NUM_LAYERS = 2
DIM_FF = 64
HEAD_DIM = D_MODEL // NHEAD
EPS = 1e-5
OUT_PAD = 128      # lane-dense output width (kernel writes 128 lanes)

# ----- f32 vector-slab layout: (VEC_ROWS, 128) -----
ROW_EMB_B = 0                      # embedding bias            (lanes :D_MODEL)
ROW_DEC_B = 1                      # decoder bias, zero-padded (lanes :128)
ROW_PE = 8                         # rows 8..15: positional encoding (T, D)
LAYER_BASE = 16
LAYER_STRIDE = 8
R_OUT_B, R_N1_W, R_N1_B, R_N2_W, R_N2_B, R_FF1_B, R_FF2_B = range(7)
VEC_ROWS = LAYER_BASE + NUM_LAYERS * LAYER_STRIDE   # 32


def _layernorm(x, w, b):
    mu = jnp.mean(x, axis=-1, keepdims=True)
    var = jnp.mean((x - mu) ** 2, axis=-1, keepdims=True)
    return (x - mu) * jax.lax.rsqrt(var + EPS) * w + b


# --------------------------------------------------------------------------
# Kernel: one batch element per grid step; tokens kept flat as (SEQ, D_MODEL).
# --------------------------------------------------------------------------
def electroformer_kernel(src_ref, vec_ref, emb_w_ref, dec_w_ref,
                         qkv_w_ref, qkv_b_ref, out_w_ref, ffn_w_ref, o_ref):
    f32 = jnp.float32
    bf16 = jnp.bfloat16

    src = src_ref[...]                                # (T, L) f32
    vec = vec_ref[...]                                # (VEC_ROWS, 128) f32

    def row(r, width=D_MODEL):                        # (1, width) f32 slice
        return vec[r:r + 1, :width]

    # embedding: Linear(L -> D) + bias, * sqrt(d_model), + positional encoding
    x = jnp.dot(src.astype(bf16), emb_w_ref[...], preferred_element_type=f32)
    x = (x + row(ROW_EMB_B)) * math.sqrt(D_MODEL)
    x = x + vec[ROW_PE:ROW_PE + SEQ, :D_MODEL]        # (T, D)

    scale = 1.0 / math.sqrt(HEAD_DIM)

    for l in range(NUM_LAYERS):                       # static unroll (2 layers)
        base = LAYER_BASE + l * LAYER_STRIDE

        # ---- multi-head self-attention (head-batched, no lane slicing) ----
        w_qkv = qkv_w_ref[l]                          # (3H, D, dh) bf16
        xb = jnp.broadcast_to(x.astype(bf16)[None], (3 * NHEAD, SEQ, D_MODEL))
        qkv = jnp.einsum('gtd,gde->gte', xb, w_qkv,
                         preferred_element_type=f32)  # (3H, T, dh) f32
        qkv = (qkv + qkv_b_ref[l]).astype(bf16)       # bias pre-broadcast over T

        q = qkv[:NHEAD]                               # (H, T, dh)  leading-dim slices
        k = qkv[NHEAD:2 * NHEAD]
        v = qkv[2 * NHEAD:]

        s = jnp.einsum('hqe,hke->hqk', q, k,
                       preferred_element_type=f32) * scale     # (H, T, T) f32
        s = s - jnp.max(s, axis=-1, keepdims=True)
        p = jnp.exp(s)
        p = p * pl.reciprocal(jnp.sum(p, axis=-1, keepdims=True), approx=True)

        ctx = jnp.einsum('hqk,hke->hqe', p.astype(bf16), v,
                         preferred_element_type=f32)            # (H, T, dh)
        proj = jnp.einsum('hqe,hef->hqf', ctx.astype(bf16), out_w_ref[l],
                          preferred_element_type=f32)           # (H, T, D)
        attn = jnp.sum(proj, axis=0) + row(base + R_OUT_B)      # (T, D)

        # TODO(synk): dropout layers are identity here (eval-mode semantics).
        x = _layernorm(x + attn, row(base + R_N1_W), row(base + R_N1_B))

        # ---- feed-forward (ReLU) ----
        ffw = ffn_w_ref[l]                             # (2, 64, 64) bf16
        ff1_w = ffw[0, :D_MODEL, :]                    # (D, F)
        ff2_w = ffw[1, :, :D_MODEL]                    # (F, D)
        h = jnp.dot(x.astype(bf16), ff1_w, preferred_element_type=f32)
        h = jnp.maximum(h + row(base + R_FF1_B, DIM_FF), 0.0)
        h2 = jnp.dot(h.astype(bf16), ff2_w, preferred_element_type=f32)
        h2 = h2 + row(base + R_FF2_B)
        x = _layernorm(x + h2, row(base + R_N2_W), row(base + R_N2_B))

    # decoder: Linear(D -> L), lane-dense (T, 128) store; wrapper slices :L
    out = jnp.dot(x.astype(bf16), dec_w_ref[...], preferred_element_type=f32)
    o_ref[...] = out + vec[ROW_DEC_B:ROW_DEC_B + 1, :]


# --------------------------------------------------------------------------
# Host-side helpers: PE, params, packing, pallas_call wrapper, reference.
# --------------------------------------------------------------------------
def make_positional_encoding(seq_len, d_model):
    position = jnp.arange(seq_len, dtype=jnp.float32)[:, None]
    div_term = jnp.exp(jnp.arange(0, d_model, 2, dtype=jnp.float32)
                       * (-math.log(10000.0) / d_model))
    pe = jnp.zeros((seq_len, d_model), dtype=jnp.float32)
    pe = pe.at[:, 0::2].set(jnp.sin(position * div_term))
    pe = pe.at[:, 1::2].set(jnp.cos(position * div_term))
    return pe


def init_params(key):
    ks = jax.random.split(key, 8)

    def w(k, shape, s=0.05):
        return (s * jax.random.normal(k, shape)).astype(jnp.float32)

    params = dict(
        emb_w=w(ks[0], (NUM_LEADS, D_MODEL)),                    # (in, out)
        emb_b=w(ks[1], (1, D_MODEL)),
        dec_w=w(ks[2], (D_MODEL, NUM_LEADS)),
        dec_b=w(ks[3], (1, NUM_LEADS)),
        qkv_w=w(ks[4], (NUM_LAYERS, D_MODEL, 3 * D_MODEL)),
        qkv_b=w(ks[5], (NUM_LAYERS, 1, 3 * D_MODEL)),
        out_w=w(ks[6], (NUM_LAYERS, D_MODEL, D_MODEL)),
        out_b=w(ks[7], (NUM_LAYERS, 1, D_MODEL)),
        n1_w=jnp.ones((NUM_LAYERS, 1, D_MODEL), jnp.float32),
        n1_b=jnp.zeros((NUM_LAYERS, 1, D_MODEL), jnp.float32),
        n2_w=jnp.ones((NUM_LAYERS, 1, D_MODEL), jnp.float32),
        n2_b=jnp.zeros((NUM_LAYERS, 1, D_MODEL), jnp.float32),
    )
    ks2 = jax.random.split(jax.random.fold_in(key, 1), 4)
    params.update(
        ff1_w=w(ks2[0], (NUM_LAYERS, D_MODEL, DIM_FF)),
        ff1_b=w(ks2[1], (NUM_LAYERS, 1, DIM_FF)),
        ff2_w=w(ks2[2], (NUM_LAYERS, DIM_FF, D_MODEL)),
        ff2_b=w(ks2[3], (NUM_LAYERS, 1, D_MODEL)),
    )
    return params


def pack_inputs(params, pe):
    bf16 = jnp.bfloat16

    # f32 vector slab: biases, LN params, PE, decoder bias.
    vec = jnp.zeros((VEC_ROWS, 128), jnp.float32)
    vec = vec.at[ROW_EMB_B, :D_MODEL].set(params['emb_b'][0])
    vec = vec.at[ROW_DEC_B, :NUM_LEADS].set(params['dec_b'][0])
    vec = vec.at[ROW_PE:ROW_PE + SEQ, :D_MODEL].set(pe)
    for l in range(NUM_LAYERS):
        base = LAYER_BASE + l * LAYER_STRIDE
        vec = vec.at[base + R_OUT_B, :D_MODEL].set(params['out_b'][l, 0])
        vec = vec.at[base + R_N1_W, :D_MODEL].set(params['n1_w'][l, 0])
        vec = vec.at[base + R_N1_B, :D_MODEL].set(params['n1_b'][l, 0])
        vec = vec.at[base + R_N2_W, :D_MODEL].set(params['n2_w'][l, 0])
        vec = vec.at[base + R_N2_B, :D_MODEL].set(params['n2_b'][l, 0])
        vec = vec.at[base + R_FF1_B, :DIM_FF].set(params['ff1_b'][l, 0])
        vec = vec.at[base + R_FF2_B, :D_MODEL].set(params['ff2_b'][l, 0])

    # QKV weights head-major: (L, D, 3D) -> (L, 3H, D, dh)
    qkv_w = params['qkv_w'].reshape(NUM_LAYERS, D_MODEL, 3, NHEAD, HEAD_DIM)
    qkv_w = jnp.transpose(qkv_w, (0, 2, 3, 1, 4))
    qkv_w = qkv_w.reshape(NUM_LAYERS, 3 * NHEAD, D_MODEL, HEAD_DIM)

    # QKV biases head-major, pre-broadcast over T: (L, 3H, T, dh) f32
    qkv_b = params['qkv_b'].reshape(NUM_LAYERS, 3 * NHEAD, HEAD_DIM)
    qkv_b = jnp.broadcast_to(qkv_b[:, :, None, :],
                             (NUM_LAYERS, 3 * NHEAD, SEQ, HEAD_DIM))
    qkv_b = jnp.asarray(qkv_b, jnp.float32)

    # attention out-proj per head: (L, D, D) -> (L, H, dh, D)
    out_w = params['out_w'].reshape(NUM_LAYERS, NHEAD, HEAD_DIM, D_MODEL)

    # FFN weights packed into (L, 2, 64, 64) (zero-padded)
    ffn_w = jnp.zeros((NUM_LAYERS, 2, DIM_FF, DIM_FF), jnp.float32)
    ffn_w = ffn_w.at[:, 0, :D_MODEL, :].set(params['ff1_w'])
    ffn_w = ffn_w.at[:, 1, :, :D_MODEL].set(params['ff2_w'])

    # decoder weight lane-padded to 128 output columns
    dec_w = jnp.zeros((D_MODEL, OUT_PAD), jnp.float32)
    dec_w = dec_w.at[:, :NUM_LEADS].set(params['dec_w'])

    return dict(
        vec=vec,
        emb_w=params['emb_w'].astype(bf16),
        dec_w=dec_w.astype(bf16),
        qkv_w=qkv_w.astype(bf16),
        qkv_b=qkv_b,
        out_w=out_w.astype(bf16),
        ffn_w=ffn_w.astype(bf16),
    )


@jax.jit
def electroformer_forward(src, packed):
    def full(shape):
        return pl.BlockSpec(shape, lambda b: (0,) * len(shape))

    out = pl.pallas_call(
        electroformer_kernel,
        grid=(BATCH,),
        in_specs=[
            pl.BlockSpec((None, SEQ, NUM_LEADS), lambda b: (b, 0, 0)),     # src
            full((VEC_ROWS, 128)),                                          # vec slab
            full((NUM_LEADS, D_MODEL)),                                     # emb_w
            full((D_MODEL, OUT_PAD)),                                       # dec_w (padded)
            full((NUM_LAYERS, 3 * NHEAD, D_MODEL, HEAD_DIM)),               # qkv_w
            full((NUM_LAYERS, 3 * NHEAD, SEQ, HEAD_DIM)),                   # qkv_b
            full((NUM_LAYERS, NHEAD, HEAD_DIM, D_MODEL)),                   # out_w
            full((NUM_LAYERS, 2, DIM_FF, DIM_FF)),                          # ffn_w
        ],
        out_specs=pl.BlockSpec((None, SEQ, OUT_PAD), lambda b: (b, 0, 0)),
        out_shape=jax.ShapeDtypeStruct((BATCH, SEQ, OUT_PAD), jnp.float32),
        compiler_params=pltpu.CompilerParams(
            dimension_semantics=("parallel",)),
    )(src, packed['vec'], packed['emb_w'], packed['dec_w'],
      packed['qkv_w'], packed['qkv_b'], packed['out_w'], packed['ffn_w'])
    return out[..., :NUM_LEADS]


# ----- pure-JAX reference (emulates the kernel's bf16 MXU operand casts) -----
def ref_forward(src, params, pe):
    bf16, f32 = jnp.bfloat16, jnp.float32
    c = lambda a: a.astype(bf16)

    def lin(x, w, b):
        return jnp.einsum('...i,io->...o', c(x), c(w),
                          preferred_element_type=f32) + b

    x = lin(src, params['emb_w'], params['emb_b']) * math.sqrt(D_MODEL) + pe
    scale = 1.0 / math.sqrt(HEAD_DIM)

    def heads(t):                                      # (B,T,D) -> (B,H,T,dh)
        return t.reshape(BATCH, SEQ, NHEAD, HEAD_DIM).transpose(0, 2, 1, 3)

    for l in range(NUM_LAYERS):
        qkv = c(lin(x, params['qkv_w'][l], params['qkv_b'][l]))
        q, k, v = jnp.split(qkv, 3, axis=-1)
        qh, kh, vh = heads(q), heads(k), heads(v)
        s = jnp.einsum('bhqe,bhke->bhqk', qh, kh,
                       preferred_element_type=f32) * scale
        p = jax.nn.softmax(s, axis=-1)
        ctx = jnp.einsum('bhqk,bhke->bhqe', c(p), vh,
                         preferred_element_type=f32)
        ctx = ctx.transpose(0, 2, 1, 3).reshape(BATCH, SEQ, D_MODEL)
        attn = lin(ctx, params['out_w'][l], params['out_b'][l])
        x = _layernorm(x + attn, params['n1_w'][l], params['n1_b'][l])
        ff = jnp.maximum(lin(x, params['ff1_w'][l], params['ff1_b'][l]), 0.0)
        ff = lin(ff, params['ff2_w'][l], params['ff2_b'][l])
        x = _layernorm(x + ff, params['n2_w'][l], params['n2_b'][l])
    return lin(x, params['dec_w'], params['dec_b'])


if __name__ == "__main__":
    key = jax.random.PRNGKey(0)
    k_src, k_par = jax.random.split(key)
    src = jax.random.normal(k_src, (BATCH, SEQ, NUM_LEADS), dtype=jnp.float32)
    params = init_params(k_par)
    pe = make_positional_encoding(SEQ, D_MODEL)
    packed = pack_inputs(params, pe)

    out = jax.block_until_ready(electroformer_forward(src, packed))
    assert out.shape == (BATCH, SEQ, NUM_LEADS)

    ref = jax.block_until_ready(ref_forward(src, params, pe))
    max_err = float(jnp.max(jnp.abs(out - ref)))
    # tolerance covers the approx-reciprocal softmax + bf16/accumulation-order noise
    assert jnp.allclose(out, ref, atol=2e-2, rtol=2e-2), \
        f"kernel mismatch vs JAX reference (max abs err {max_err})"

    print("KERNEL_OK")
</pallas_src>

<mosaic_0001>
module attributes {stable_mosaic.version = 11 : i64} {
  func.func @electroformer_kernel(%arg0: i32, %arg1: memref<1x8x12xf32, #tpu.memory_space<vmem>>, %arg2: memref<32x128xf32, #tpu.memory_space<vmem>>, %arg3: memref<12x32xbf16, #tpu.memory_space<vmem>>, %arg4: memref<32x128xbf16, #tpu.memory_space<vmem>>, %arg5: memref<2x12x32x8xbf16, #tpu.memory_space<vmem>>, %arg6: memref<2x12x8x8xf32, #tpu.memory_space<vmem>>, %arg7: memref<2x4x8x32xbf16, #tpu.memory_space<vmem>>, %arg8: memref<2x2x64x64xbf16, #tpu.memory_space<vmem>>, %arg9: memref<1x8x128xf32, #tpu.memory_space<vmem>>) attributes {dimension_semantics = [#tpu.dimension_semantics<parallel>], iteration_bounds = array<i64: 2>, scalar_prefetch = 0 : i64, scratch_operands = 0 : i64, tpu.core_type = #tpu.core_type<tc>, window_params = [{transform_indices = @transform_0, window_bounds = array<i64: 1, 8, 12>}, {pipeline_mode = #tpu.pipeline_mode<synchronous>, transform_indices = @transform_1, window_bounds = array<i64: 32, 128>}, {pipeline_mode = #tpu.pipeline_mode<synchronous>, transform_indices = @transform_2, window_bounds = array<i64: 12, 32>}, {pipeline_mode = #tpu.pipeline_mode<synchronous>, transform_indices = @transform_3, window_bounds = array<i64: 32, 128>}, {pipeline_mode = #tpu.pipeline_mode<synchronous>, transform_indices = @transform_4, window_bounds = array<i64: 2, 12, 32, 8>}, {pipeline_mode = #tpu.pipeline_mode<synchronous>, transform_indices = @transform_5, window_bounds = array<i64: 2, 12, 8, 8>}, {pipeline_mode = #tpu.pipeline_mode<synchronous>, transform_indices = @transform_6, window_bounds = array<i64: 2, 4, 8, 32>}, {pipeline_mode = #tpu.pipeline_mode<synchronous>, transform_indices = @transform_7, window_bounds = array<i64: 2, 2, 64, 64>}, {transform_indices = @transform_8, window_bounds = array<i64: 1, 8, 128>}]} {
    %c0 = arith.constant 0 : index
    %c0_0 = arith.constant 0 : index
    %c0_1 = arith.constant 0 : index
    %0 = vector.load %arg1[%c0, %c0_0, %c0_1] : memref<1x8x12xf32, #tpu.memory_space<vmem>>, vector<1x8x12xf32>
    %1 = vector.shape_cast %0 : vector<1x8x12xf32> to vector<8x12xf32>
    %c0_2 = arith.constant 0 : index
    %c0_3 = arith.constant 0 : index
    %2 = vector.load %arg2[%c0_2, %c0_3] : memref<32x128xf32, #tpu.memory_space<vmem>>, vector<32x128xf32>
    %3 = arith.truncf %1 : vector<8x12xf32> to vector<8x12xbf16>
    %c0_4 = arith.constant 0 : index
    %c0_5 = arith.constant 0 : index
    %4 = vector.load %arg3[%c0_4, %c0_5] : memref<12x32xbf16, #tpu.memory_space<vmem>>, vector<12x32xbf16>
    %cst = arith.constant dense<0.000000e+00> : vector<8x32xf32>
    %5 = tpu.matmul %3, %4, %cst {dimension_numbers = #tpu.dot_dimension_numbers<[1], [0], [0], [1], [0, 0, 1, 1], [], []>} : vector<8x12xbf16>, vector<12x32xbf16>, vector<8x32xf32> -> vector<8x32xf32>
    %6 = vector.extract_strided_slice %2 {offsets = [0, 0], sizes = [1, 32], strides = [1, 1]} : vector<32x128xf32> to vector<1x32xf32>
    %7 = vector.broadcast %6 : vector<1x32xf32> to vector<8x32xf32>
    %8 = arith.addf %5, %7 : vector<8x32xf32>
    %cst_6 = arith.constant 5.65685415 : f32
    %9 = vector.broadcast %cst_6 : f32 to vector<8x32xf32>
    %10 = arith.mulf %8, %9 : vector<8x32xf32>
    %11 = vector.extract_strided_slice %2 {offsets = [8, 0], sizes = [8, 32], strides = [1, 1]} : vector<32x128xf32> to vector<8x32xf32>
    %12 = arith.addf %10, %11 : vector<8x32xf32>
    %c0_7 = arith.constant 0 : index
    %c0_8 = arith.constant 0 : index
    %c0_9 = arith.constant 0 : index
    %c0_10 = arith.constant 0 : index
    %13 = vector.load %arg5[%c0_7, %c0_8, %c0_9, %c0_10] : memref<2x12x32x8xbf16, #tpu.memory_space<vmem>>, vector<1x12x32x8xbf16>
    %14 = vector.shape_cast %13 : vector<1x12x32x8xbf16> to vector<12x32x8xbf16>
    %15 = arith.truncf %12 : vector<8x32xf32> to vector<8x32xbf16>
    %16 = vector.shape_cast %15 : vector<8x32xbf16> to vector<1x8x32xbf16>
    %17 = vector.shape_cast %16 : vector<1x8x32xbf16> to vector<1x8x32xbf16>
    %18 = vector.broadcast %17 : vector<1x8x32xbf16> to vector<12x8x32xbf16>
    "tpu.trace_start"() <{level = 10 : i32, message = "gtd,gde->gte"}> : () -> ()
    %cst_11 = arith.constant dense<0.000000e+00> : vector<12x8x8xf32>
    %19 = tpu.matmul %18, %14, %cst_11 {dimension_numbers = #tpu.dot_dimension_numbers<[2], [1], [1], [2], [0, 0, 0, 1, 1, 2], [0], [0]>} : vector<12x8x32xbf16>, vector<12x32x8xbf16>, vector<12x8x8xf32> -> vector<12x8x8xf32>
    "tpu.trace_stop"() : () -> ()
    %c0_12 = arith.constant 0 : index
    %c0_13 = arith.constant 0 : index
    %c0_14 = arith.constant 0 : index
    %c0_15 = arith.constant 0 : index
    %20 = vector.load %arg6[%c0_12, %c0_13, %c0_14, %c0_15] : memref<2x12x8x8xf32, #tpu.memory_space<vmem>>, vector<1x12x8x8xf32>
    %21 = vector.shape_cast %20 : vector<1x12x8x8xf32> to vector<12x8x8xf32>
    %22 = arith.addf %19, %21 : vector<12x8x8xf32>
    %23 = arith.truncf %22 : vector<12x8x8xf32> to vector<12x8x8xbf16>
    %24 = vector.extract_strided_slice %23 {offsets = [0, 0, 0], sizes = [4, 8, 8], strides = [1, 1, 1]} : vector<12x8x8xbf16> to vector<4x8x8xbf16>
    %25 = vector.extract_strided_slice %23 {offsets = [4, 0, 0], sizes = [4, 8, 8], strides = [1, 1, 1]} : vector<12x8x8xbf16> to vector<4x8x8xbf16>
    %26 = vector.extract_strided_slice %23 {offsets = [8, 0, 0], sizes = [4, 8, 8], strides = [1, 1, 1]} : vector<12x8x8xbf16> to vector<4x8x8xbf16>
    "tpu.trace_start"() <{level = 10 : i32, message = "hqe,hke->hqk"}> : () -> ()
    %cst_16 = arith.constant dense<0.000000e+00> : vector<4x8x8xf32>
    %27 = tpu.matmul %24, %25, %cst_16 {dimension_numbers = #tpu.dot_dimension_numbers<[2], [2], [1], [1], [0, 0, 0, 1, 1, 1], [0], [0]>} : vector<4x8x8xbf16>, vector<4x8x8xbf16>, vector<4x8x8xf32> -> vector<4x8x8xf32>
    "tpu.trace_stop"() : () -> ()
    %cst_17 = arith.constant 0.353553385 : f32
    %28 = vector.broadcast %cst_17 : f32 to vector<4x8x8xf32>
    %29 = arith.mulf %27, %28 : vector<4x8x8xf32>
    %cst_18 = arith.constant dense<0xFF800000> : vector<4x8xf32>
    %30 = vector.multi_reduction <maximumf>, %29, %cst_18 [2] : vector<4x8x8xf32> to vector<4x8xf32>
    %31 = vector.shape_cast %30 : vector<4x8xf32> to vector<4x8x1xf32>
    %32 = vector.broadcast %31 : vector<4x8x1xf32> to vector<4x8x8xf32>
    %33 = arith.subf %29, %32 : vector<4x8x8xf32>
    %34 = math.exp %33 : vector<4x8x8xf32>
    %cst_19 = arith.constant dense<0.000000e+00> : vector<4x8xf32>
    %35 = vector.multi_reduction <add>, %34, %cst_19 [2] : vector<4x8x8xf32> to vector<4x8xf32>
    %36 = vector.shape_cast %35 : vector<4x8xf32> to vector<4x8x1xf32>
    %37 = tpu.reciprocal %36 {approx = true} : vector<4x8x1xf32> -> vector<4x8x1xf32>
    %38 = vector.broadcast %37 : vector<4x8x1xf32> to vector<4x8x8xf32>
    %39 = arith.mulf %34, %38 : vector<4x8x8xf32>
    %40 = arith.truncf %39 : vector<4x8x8xf32> to vector<4x8x8xbf16>
    "tpu.trace_start"() <{level = 10 : i32, message = "hqk,hke->hqe"}> : () -> ()
    %cst_20 = arith.constant dense<0.000000e+00> : vector<4x8x8xf32>
    %41 = tpu.matmul %40, %26, %cst_20 {dimension_numbers = #tpu.dot_dimension_numbers<[2], [1], [1], [2], [0, 0, 0, 1, 1, 2], [0], [0]>} : vector<4x8x8xbf16>, vector<4x8x8xbf16>, vector<4x8x8xf32> -> vector<4x8x8xf32>
    "tpu.trace_stop"() : () -> ()
    %42 = arith.truncf %41 : vector<4x8x8xf32> to vector<4x8x8xbf16>
    %c0_21 = arith.constant 0 : index
    %c0_22 = arith.constant 0 : index
    %c0_23 = arith.constant 0 : index
    %c0_24 = arith.constant 0 : index
    %43 = vector.load %arg7[%c0_21, %c0_22, %c0_23, %c0_24] : memref<2x4x8x32xbf16, #tpu.memory_space<vmem>>, vector<1x4x8x32xbf16>
    %44 = vector.shape_cast %43 : vector<1x4x8x32xbf16> to vector<4x8x32xbf16>
    "tpu.trace_start"() <{level = 10 : i32, message = "hqe,hef->hqf"}> : () -> ()
    %cst_25 = arith.constant dense<0.000000e+00> : vector<4x8x32xf32>
    %45 = tpu.matmul %42, %44, %cst_25 {dimension_numbers = #tpu.dot_dimension_numbers<[2], [1], [1], [2], [0, 0, 0, 1, 1, 2], [0], [0]>} : vector<4x8x8xbf16>, vector<4x8x32xbf16>, vector<4x8x32xf32> -> vector<4x8x32xf32>
    "tpu.trace_stop"() : () -> ()
    %cst_26 = arith.constant dense<0.000000e+00> : vector<8x32xf32>
    %46 = vector.multi_reduction <add>, %45, %cst_26 [0] : vector<4x8x32xf32> to vector<8x32xf32>
    %47 = vector.extract_strided_slice %2 {offsets = [16, 0], sizes = [1, 32], strides = [1, 1]} : vector<32x128xf32> to vector<1x32xf32>
    %48 = vector.broadcast %47 : vector<1x32xf32> to vector<8x32xf32>
    %49 = arith.addf %46, %48 : vector<8x32xf32>
    %50 = arith.addf %12, %49 : vector<8x32xf32>
    %51 = vector.extract_strided_slice %2 {offsets = [17, 0], sizes = [1, 32], strides = [1, 1]} : vector<32x128xf32> to vector<1x32xf32>
    %52 = vector.extract_strided_slice %2 {offsets = [18, 0], sizes = [1, 32], strides = [1, 1]} : vector<32x128xf32> to vector<1x32xf32>
    %cst_27 = arith.constant dense<0.000000e+00> : vector<8xf32>
    %53 = vector.multi_reduction <add>, %50, %cst_27 [1] : vector<8x32xf32> to vector<8xf32>
    %54 = vector.shape_cast %53 : vector<8xf32> to vector<8x1xf32>
    %cst_28 = arith.constant 3.200000e+01 : f32
    %55 = vector.broadcast %cst_28 : f32 to vector<8x1xf32>
    %56 = arith.divf %54, %55 : vector<8x1xf32>
    %57 = vector.broadcast %56 : vector<8x1xf32> to vector<8x32xf32>
    %58 = arith.subf %50, %57 : vector<8x32xf32>
    %59 = arith.mulf %58, %58 : vector<8x32xf32>
    %cst_29 = arith.constant dense<0.000000e+00> : vector<8xf32>
    %60 = vector.multi_reduction <add>, %59, %cst_29 [1] : vector<8x32xf32> to vector<8xf32>
    %61 = vector.shape_cast %60 : vector<8xf32> to vector<8x1xf32>
    %cst_30 = arith.constant 3.200000e+01 : f32
    %62 = vector.broadcast %cst_30 : f32 to vector<8x1xf32>
    %63 = arith.divf %61, %62 : vector<8x1xf32>
    %64 = vector.broadcast %56 : vector<8x1xf32> to vector<8x32xf32>
    %65 = arith.subf %50, %64 : vector<8x32xf32>
    %cst_31 = arith.constant 9.99999974E-6 : f32
    %66 = vector.broadcast %cst_31 : f32 to vector<8x1xf32>
    %67 = arith.addf %63, %66 : vector<8x1xf32>
    %68 = math.rsqrt %67 : vector<8x1xf32>
    %69 = vector.broadcast %68 : vector<8x1xf32> to vector<8x32xf32>
    %70 = arith.mulf %65, %69 : vector<8x32xf32>
    %71 = vector.broadcast %51 : vector<1x32xf32> to vector<8x32xf32>
    %72 = arith.mulf %70, %71 : vector<8x32xf32>
    %73 = vector.broadcast %52 : vector<1x32xf32> to vector<8x32xf32>
    %74 = arith.addf %72, %73 : vector<8x32xf32>
    %c0_32 = arith.constant 0 : index
    %c0_33 = arith.constant 0 : index
    %c0_34 = arith.constant 0 : index
    %c0_35 = arith.constant 0 : index
    %75 = vector.load %arg8[%c0_32, %c0_33, %c0_34, %c0_35] : memref<2x2x64x64xbf16, #tpu.memory_space<vmem>>, vector<1x2x64x64xbf16>
    %76 = vector.shape_cast %75 : vector<1x2x64x64xbf16> to vector<2x64x64xbf16>
    %77 = vector.extract_strided_slice %76 {offsets = [0, 0, 0], sizes = [1, 32, 64], strides = [1, 1, 1]} : vector<2x64x64xbf16> to vector<1x32x64xbf16>
    %78 = vector.shape_cast %77 : vector<1x32x64xbf16> to vector<32x64xbf16>
    %79 = vector.extract_strided_slice %76 {offsets = [1, 0, 0], sizes = [1, 64, 32], strides = [1, 1, 1]} : vector<2x64x64xbf16> to vector<1x64x32xbf16>
    %80 = vector.shape_cast %79 : vector<1x64x32xbf16> to vector<64x32xbf16>
    %81 = arith.truncf %74 : vector<8x32xf32> to vector<8x32xbf16>
    %cst_36 = arith.constant dense<0.000000e+00> : vector<8x64xf32>
    %82 = tpu.matmul %81, %78, %cst_36 {dimension_numbers = #tpu.dot_dimension_numbers<[1], [0], [0], [1], [0, 0, 1, 1], [], []>} : vector<8x32xbf16>, vector<32x64xbf16>, vector<8x64xf32> -> vector<8x64xf32>
    %83 = vector.extract_strided_slice %2 {offsets = [21, 0], sizes = [1, 64], strides = [1, 1]} : vector<32x128xf32> to vector<1x64xf32>
    %84 = vector.broadcast %83 : vector<1x64xf32> to vector<8x64xf32>
    %85 = arith.addf %82, %84 : vector<8x64xf32>
    %cst_37 = arith.constant 0.000000e+00 : f32
    %86 = vector.broadcast %cst_37 : f32 to vector<8x64xf32>
    %87 = arith.maximumf %85, %86 : vector<8x64xf32>
    %88 = arith.truncf %87 : vector<8x64xf32> to vector<8x64xbf16>
    %cst_38 = arith.constant dense<0.000000e+00> : vector<8x32xf32>
    %89 = tpu.matmul %88, %80, %cst_38 {dimension_numbers = #tpu.dot_dimension_numbers<[1], [0], [0], [1], [0, 0, 1, 1], [], []>} : vector<8x64xbf16>, vector<64x32xbf16>, vector<8x32xf32> -> vector<8x32xf32>
    %90 = vector.extract_strided_slice %2 {offsets = [22, 0], sizes = [1, 32], strides = [1, 1]} : vector<32x128xf32> to vector<1x32xf32>
    %91 = vector.broadcast %90 : vector<1x32xf32> to vector<8x32xf32>
    %92 = arith.addf %89, %91 : vector<8x32xf32>
    %93 = arith.addf %74, %92 : vector<8x32xf32>
    %94 = vector.extract_strided_slice %2 {offsets = [19, 0], sizes = [1, 32], strides = [1, 1]} : vector<32x128xf32> to vector<1x32xf32>
    %95 = vector.extract_strided_slice %2 {offsets = [20, 0], sizes = [1, 32], strides = [1, 1]} : vector<32x128xf32> to vector<1x32xf32>
    %cst_39 = arith.constant dense<0.000000e+00> : vector<8xf32>
    %96 = vector.multi_reduction <add>, %93, %cst_39 [1] : vector<8x32xf32> to vector<8xf32>
    %97 = vector.shape_cast %96 : vector<8xf32> to vector<8x1xf32>
    %cst_40 = arith.constant 3.200000e+01 : f32
    %98 = vector.broadcast %cst_40 : f32 to vector<8x1xf32>
    %99 = arith.divf %97, %98 : vector<8x1xf32>
    %100 = vector.broadcast %99 : vector<8x1xf32> to vector<8x32xf32>
    %101 = arith.subf %93, %100 : vector<8x32xf32>
    %102 = arith.mulf %101, %101 : vector<8x32xf32>
    %cst_41 = arith.constant dense<0.000000e+00> : vector<8xf32>
    %103 = vector.multi_reduction <add>, %102, %cst_41 [1] : vector<8x32xf32> to vector<8xf32>
    %104 = vector.shape_cast %103 : vector<8xf32> to vector<8x1xf32>
    %cst_42 = arith.constant 3.200000e+01 : f32
    %105 = vector.broadcast %cst_42 : f32 to vector<8x1xf32>
    %106 = arith.divf %104, %105 : vector<8x1xf32>
    %107 = vector.broadcast %99 : vector<8x1xf32> to vector<8x32xf32>
    %108 = arith.subf %93, %107 : vector<8x32xf32>
    %cst_43 = arith.constant 9.99999974E-6 : f32
    %109 = vector.broadcast %cst_43 : f32 to vector<8x1xf32>
    %110 = arith.addf %106, %109 : vector<8x1xf32>
    %111 = math.rsqrt %110 : vector<8x1xf32>
    %112 = vector.broadcast %111 : vector<8x1xf32> to vector<8x32xf32>
    %113 = arith.mulf %108, %112 : vector<8x32xf32>
    %114 = vector.broadcast %94 : vector<1x32xf32> to vector<8x32xf32>
    %115 = arith.mulf %113, %114 : vector<8x32xf32>
    %116 = vector.broadcast %95 : vector<1x32xf32> to vector<8x32xf32>
    %117 = arith.addf %115, %116 : vector<8x32xf32>
    %c1 = arith.constant 1 : index
    %c0_44 = arith.constant 0 : index
    %c0_45 = arith.constant 0 : index
    %c0_46 = arith.constant 0 : index
    %118 = vector.load %arg5[%c1, %c0_44, %c0_45, %c0_46] : memref<2x12x32x8xbf16, #tpu.memory_space<vmem>>, vector<1x12x32x8xbf16>
    %119 = vector.shape_cast %118 : vector<1x12x32x8xbf16> to vector<12x32x8xbf16>
    %120 = arith.truncf %117 : vector<8x32xf32> to vector<8x32xbf16>
    %121 = vector.shape_cast %120 : vector<8x32xbf16> to vector<1x8x32xbf16>
    %122 = vector.shape_cast %121 : vector<1x8x32xbf16> to vector<1x8x32xbf16>
    %123 = vector.broadcast %122 : vector<1x8x32xbf16> to vector<12x8x32xbf16>
    "tpu.trace_start"() <{level = 10 : i32, message = "gtd,gde->gte"}> : () -> ()
    %cst_47 = arith.constant dense<0.000000e+00> : vector<12x8x8xf32>
    %124 = tpu.matmul %123, %119, %cst_47 {dimension_numbers = #tpu.dot_dimension_numbers<[2], [1], [1], [2], [0, 0, 0, 1, 1, 2], [0], [0]>} : vector<12x8x32xbf16>, vector<12x32x8xbf16>, vector<12x8x8xf32> -> vector<12x8x8xf32>
    "tpu.trace_stop"() : () -> ()
    %c1_48 = arith.constant 1 : index
    %c0_49 = arith.constant 0 : index
    %c0_50 = arith.constant 0 : index
    %c0_51 = arith.constant 0 : index
    %125 = vector.load %arg6[%c1_48, %c0_49, %c0_50, %c0_51] : memref<2x12x8x8xf32, #tpu.memory_space<vmem>>, vector<1x12x8x8xf32>
    %126 = vector.shape_cast %125 : vector<1x12x8x8xf32> to vector<12x8x8xf32>
    %127 = arith.addf %124, %126 : vector<12x8x8xf32>
    %128 = arith.truncf %127 : vector<12x8x8xf32> to vector<12x8x8xbf16>
    %129 = vector.extract_strided_slice %128 {offsets = [0, 0, 0], sizes = [4, 8, 8], strides = [1, 1, 1]} : vector<12x8x8xbf16> to vector<4x8x8xbf16>
    %130 = vector.extract_strided_slice %128 {offsets = [4, 0, 0], sizes = [4, 8, 8], strides = [1, 1, 1]} : vector<12x8x8xbf16> to vector<4x8x8xbf16>
    %131 = vector.extract_strided_slice %128 {offsets = [8, 0, 0], sizes = [4, 8, 8], strides = [1, 1, 1]} : vector<12x8x8xbf16> to vector<4x8x8xbf16>
    "tpu.trace_start"() <{level = 10 : i32, message = "hqe,hke->hqk"}> : () -> ()
    %cst_52 = arith.constant dense<0.000000e+00> : vector<4x8x8xf32>
    %132 = tpu.matmul %129, %130, %cst_52 {dimension_numbers = #tpu.dot_dimension_numbers<[2], [2], [1], [1], [0, 0, 0, 1, 1, 1], [0], [0]>} : vector<4x8x8xbf16>, vector<4x8x8xbf16>, vector<4x8x8xf32> -> vector<4x8x8xf32>
    "tpu.trace_stop"() : () -> ()
    %cst_53 = arith.constant 0.353553385 : f32
    %133 = vector.broadcast %cst_53 : f32 to vector<4x8x8xf32>
    %134 = arith.mulf %132, %133 : vector<4x8x8xf32>
    %cst_54 = arith.constant dense<0xFF800000> : vector<4x8xf32>
    %135 = vector.multi_reduction <maximumf>, %134, %cst_54 [2] : vector<4x8x8xf32> to vector<4x8xf32>
    %136 = vector.shape_cast %135 : vector<4x8xf32> to vector<4x8x1xf32>
    %137 = vector.broadcast %136 : vector<4x8x1xf32> to vector<4x8x8xf32>
    %138 = arith.subf %134, %137 : vector<4x8x8xf32>
    %139 = math.exp %138 : vector<4x8x8xf32>
    %cst_55 = arith.constant dense<0.000000e+00> : vector<4x8xf32>
    %140 = vector.multi_reduction <add>, %139, %cst_55 [2] : vector<4x8x8xf32> to vector<4x8xf32>
    %141 = vector.shape_cast %140 : vector<4x8xf32> to vector<4x8x1xf32>
    %142 = tpu.reciprocal %141 {approx = true} : vector<4x8x1xf32> -> vector<4x8x1xf32>
    %143 = vector.broadcast %142 : vector<4x8x1xf32> to vector<4x8x8xf32>
    %144 = arith.mulf %139, %143 : vector<4x8x8xf32>
    %145 = arith.truncf %144 : vector<4x8x8xf32> to vector<4x8x8xbf16>
    "tpu.trace_start"() <{level = 10 : i32, message = "hqk,hke->hqe"}> : () -> ()
    %cst_56 = arith.constant dense<0.000000e+00> : vector<4x8x8xf32>
    %146 = tpu.matmul %145, %131, %cst_56 {dimension_numbers = #tpu.dot_dimension_numbers<[2], [1], [1], [2], [0, 0, 0, 1, 1, 2], [0], [0]>} : vector<4x8x8xbf16>, vector<4x8x8xbf16>, vector<4x8x8xf32> -> vector<4x8x8xf32>
    "tpu.trace_stop"() : () -> ()
    %147 = arith.truncf %146 : vector<4x8x8xf32> to vector<4x8x8xbf16>
    %c1_57 = arith.constant 1 : index
    %c0_58 = arith.constant 0 : index
    %c0_59 = arith.constant 0 : index
    %c0_60 = arith.constant 0 : index
    %148 = vector.load %arg7[%c1_57, %c0_58, %c0_59, %c0_60] : memref<2x4x8x32xbf16, #tpu.memory_space<vmem>>, vector<1x4x8x32xbf16>
    %149 = vector.shape_cast %148 : vector<1x4x8x32xbf16> to vector<4x8x32xbf16>
    "tpu.trace_start"() <{level = 10 : i32, message = "hqe,hef->hqf"}> : () -> ()
    %cst_61 = arith.constant dense<0.000000e+00> : vector<4x8x32xf32>
    %150 = tpu.matmul %147, %149, %cst_61 {dimension_numbers = #tpu.dot_dimension_numbers<[2], [1], [1], [2], [0, 0, 0, 1, 1, 2], [0], [0]>} : vector<4x8x8xbf16>, vector<4x8x32xbf16>, vector<4x8x32xf32> -> vector<4x8x32xf32>
    "tpu.trace_stop"() : () -> ()
    %cst_62 = arith.constant dense<0.000000e+00> : vector<8x32xf32>
    %151 = vector.multi_reduction <add>, %150, %cst_62 [0] : vector<4x8x32xf32> to vector<8x32xf32>
    %152 = vector.extract_strided_slice %2 {offsets = [24, 0], sizes = [1, 32], strides = [1, 1]} : vector<32x128xf32> to vector<1x32xf32>
    %153 = vector.broadcast %152 : vector<1x32xf32> to vector<8x32xf32>
    %154 = arith.addf %151, %153 : vector<8x32xf32>
    %155 = arith.addf %117, %154 : vector<8x32xf32>
    %156 = vector.extract_strided_slice %2 {offsets = [25, 0], sizes = [1, 32], strides = [1, 1]} : vector<32x128xf32> to vector<1x32xf32>
    %157 = vector.extract_strided_slice %2 {offsets = [26, 0], sizes = [1, 32], strides = [1, 1]} : vector<32x128xf32> to vector<1x32xf32>
    %cst_63 = arith.constant dense<0.000000e+00> : vector<8xf32>
    %158 = vector.multi_reduction <add>, %155, %cst_63 [1] : vector<8x32xf32> to vector<8xf32>
    %159 = vector.shape_cast %158 : vector<8xf32> to vector<8x1xf32>
    %cst_64 = arith.constant 3.200000e+01 : f32
    %160 = vector.broadcast %cst_64 : f32 to vector<8x1xf32>
    %161 = arith.divf %159, %160 : vector<8x1xf32>
    %162 = vector.broadcast %161 : vector<8x1xf32> to vector<8x32xf32>
    %163 = arith.subf %155, %162 : vector<8x32xf32>
    %164 = arith.mulf %163, %163 : vector<8x32xf32>
    %cst_65 = arith.constant dense<0.000000e+00> : vector<8xf32>
    %165 = vector.multi_reduction <add>, %164, %cst_65 [1] : vector<8x32xf32> to vector<8xf32>
    %166 = vector.shape_cast %165 : vector<8xf32> to vector<8x1xf32>
    %cst_66 = arith.constant 3.200000e+01 : f32
    %167 = vector.broadcast %cst_66 : f32 to vector<8x1xf32>
    %168 = arith.divf %166, %167 : vector<8x1xf32>
    %169 = vector.broadcast %161 : vector<8x1xf32> to vector<8x32xf32>
    %170 = arith.subf %155, %169 : vector<8x32xf32>
    %cst_67 = arith.constant 9.99999974E-6 : f32
    %171 = vector.broadcast %cst_67 : f32 to vector<8x1xf32>
    %172 = arith.addf %168, %171 : vector<8x1xf32>
    %173 = math.rsqrt %172 : vector<8x1xf32>
    %174 = vector.broadcast %173 : vector<8x1xf32> to vector<8x32xf32>
    %175 = arith.mulf %170, %174 : vector<8x32xf32>
    %176 = vector.broadcast %156 : vector<1x32xf32> to vector<8x32xf32>
    %177 = arith.mulf %175, %176 : vector<8x32xf32>
    %178 = vector.broadcast %157 : vector<1x32xf32> to vector<8x32xf32>
    %179 = arith.addf %177, %178 : vector<8x32xf32>
    %c1_68 = arith.constant 1 : index
    %c0_69 = arith.constant 0 : index
    %c0_70 = arith.constant 0 : index
    %c0_71 = arith.constant 0 : index
    %180 = vector.load %arg8[%c1_68, %c0_69, %c0_70, %c0_71] : memref<2x2x64x64xbf16, #tpu.memory_space<vmem>>, vector<1x2x64x64xbf16>
    %181 = vector.shape_cast %180 : vector<1x2x64x64xbf16> to vector<2x64x64xbf16>
    %182 = vector.extract_strided_slice %181 {offsets = [0, 0, 0], sizes = [1, 32, 64], strides = [1, 1, 1]} : vector<2x64x64xbf16> to vector<1x32x64xbf16>
    %183 = vector.shape_cast %182 : vector<1x32x64xbf16> to vector<32x64xbf16>
    %184 = vector.extract_strided_slice %181 {offsets = [1, 0, 0], sizes = [1, 64, 32], strides = [1, 1, 1]} : vector<2x64x64xbf16> to vector<1x64x32xbf16>
    %185 = vector.shape_cast %184 : vector<1x64x32xbf16> to vector<64x32xbf16>
    %186 = arith.truncf %179 : vector<8x32xf32> to vector<8x32xbf16>
    %cst_72 = arith.constant dense<0.000000e+00> : vector<8x64xf32>
    %187 = tpu.matmul %186, %183, %cst_72 {dimension_numbers = #tpu.dot_dimension_numbers<[1], [0], [0], [1], [0, 0, 1, 1], [], []>} : vector<8x32xbf16>, vector<32x64xbf16>, vector<8x64xf32> -> vector<8x64xf32>
    %188 = vector.extract_strided_slice %2 {offsets = [29, 0], sizes = [1, 64], strides = [1, 1]} : vector<32x128xf32> to vector<1x64xf32>
    %189 = vector.broadcast %188 : vector<1x64xf32> to vector<8x64xf32>
    %190 = arith.addf %187, %189 : vector<8x64xf32>
    %cst_73 = arith.constant 0.000000e+00 : f32
    %191 = vector.broadcast %cst_73 : f32 to vector<8x64xf32>
    %192 = arith.maximumf %190, %191 : vector<8x64xf32>
    %193 = arith.truncf %192 : vector<8x64xf32> to vector<8x64xbf16>
    %cst_74 = arith.constant dense<0.000000e+00> : vector<8x32xf32>
    %194 = tpu.matmul %193, %185, %cst_74 {dimension_numbers = #tpu.dot_dimension_numbers<[1], [0], [0], [1], [0, 0, 1, 1], [], []>} : vector<8x64xbf16>, vector<64x32xbf16>, vector<8x32xf32> -> vector<8x32xf32>
    %195 = vector.extract_strided_slice %2 {offsets = [30, 0], sizes = [1, 32], strides = [1, 1]} : vector<32x128xf32> to vector<1x32xf32>
    %196 = vector.broadcast %195 : vector<1x32xf32> to vector<8x32xf32>
    %197 = arith.addf %194, %196 : vector<8x32xf32>
    %198 = arith.addf %179, %197 : vector<8x32xf32>
    %199 = vector.extract_strided_slice %2 {offsets = [27, 0], sizes = [1, 32], strides = [1, 1]} : vector<32x128xf32> to vector<1x32xf32>
    %200 = vector.extract_strided_slice %2 {offsets = [28, 0], sizes = [1, 32], strides = [1, 1]} : vector<32x128xf32> to vector<1x32xf32>
    %cst_75 = arith.constant dense<0.000000e+00> : vector<8xf32>
    %201 = vector.multi_reduction <add>, %198, %cst_75 [1] : vector<8x32xf32> to vector<8xf32>
    %202 = vector.shape_cast %201 : vector<8xf32> to vector<8x1xf32>
    %cst_76 = arith.constant 3.200000e+01 : f32
    %203 = vector.broadcast %cst_76 : f32 to vector<8x1xf32>
    %204 = arith.divf %202, %203 : vector<8x1xf32>
    %205 = vector.broadcast %204 : vector<8x1xf32> to vector<8x32xf32>
    %206 = arith.subf %198, %205 : vector<8x32xf32>
    %207 = arith.mulf %206, %206 : vector<8x32xf32>
    %cst_77 = arith.constant dense<0.000000e+00> : vector<8xf32>
    %208 = vector.multi_reduction <add>, %207, %cst_77 [1] : vector<8x32xf32> to vector<8xf32>
    %209 = vector.shape_cast %208 : vector<8xf32> to vector<8x1xf32>
    %cst_78 = arith.constant 3.200000e+01 : f32
    %210 = vector.broadcast %cst_78 : f32 to vector<8x1xf32>
    %211 = arith.divf %209, %210 : vector<8x1xf32>
    %212 = vector.broadcast %204 : vector<8x1xf32> to vector<8x32xf32>
    %213 = arith.subf %198, %212 : vector<8x32xf32>
    %cst_79 = arith.constant 9.99999974E-6 : f32
    %214 = vector.broadcast %cst_79 : f32 to vector<8x1xf32>
    %215 = arith.addf %211, %214 : vector<8x1xf32>
    %216 = math.rsqrt %215 : vector<8x1xf32>
    %217 = vector.broadcast %216 : vector<8x1xf32> to vector<8x32xf32>
    %218 = arith.mulf %213, %217 : vector<8x32xf32>
    %219 = vector.broadcast %199 : vector<1x32xf32> to vector<8x32xf32>
    %220 = arith.mulf %218, %219 : vector<8x32xf32>
    %221 = vector.broadcast %200 : vector<1x32xf32> to vector<8x32xf32>
    %222 = arith.addf %220, %221 : vector<8x32xf32>
    %223 = arith.truncf %222 : vector<8x32xf32> to vector<8x32xbf16>
    %c0_80 = arith.constant 0 : index
    %c0_81 = arith.constant 0 : index
    %224 = vector.load %arg4[%c0_80, %c0_81] : memref<32x128xbf16, #tpu.memory_space<vmem>>, vector<32x128xbf16>
    %cst_82 = arith.constant dense<0.000000e+00> : vector<8x128xf32>
    %225 = tpu.matmul %223, %224, %cst_82 {dimension_numbers = #tpu.dot_dimension_numbers<[1], [0], [0], [1], [0, 0, 1, 1], [], []>} : vector<8x32xbf16>, vector<32x128xbf16>, vector<8x128xf32> -> vector<8x128xf32>
    %226 = vector.extract_strided_slice %2 {offsets = [1, 0], sizes = [1, 128], strides = [1, 1]} : vector<32x128xf32> to vector<1x128xf32>
    %227 = vector.broadcast %226 : vector<1x128xf32> to vector<8x128xf32>
    %228 = arith.addf %225, %227 : vector<8x128xf32>
    %c0_83 = arith.constant 0 : index
    %c0_84 = arith.constant 0 : index
    %c0_85 = arith.constant 0 : index
    %229 = vector.load %arg9[%c0_83, %c0_84, %c0_85] : memref<1x8x128xf32, #tpu.memory_space<vmem>>, vector<1x8x128xf32>
    %230 = vector.shape_cast %229 : vector<1x8x128xf32> to vector<8x128xf32>
    %231 = vector.shape_cast %228 : vector<8x128xf32> to vector<1x8x128xf32>
    tpu.vector_store %arg9[%c0_83, %c0_84, %c0_85], %231 {strides = array<i32>} : memref<1x8x128xf32, #tpu.memory_space<vmem>>, vector<1x8x128xf32>,
    return
  }
  func.func @transform_0(%arg0: i32) -> (i32, i32, i32) {
    %c0_i32 = arith.constant 0 : i32
    %c0_i32_0 = arith.constant 0 : i32
    %c0_i32_1 = arith.constant 0 : i32
    return %arg0, %c0_i32, %c0_i32_0 : i32, i32, i32
  }
  func.func @transform_1(%arg0: i32) -> (i32, i32) {
    %c0_i32 = arith.constant 0 : i32
    %c0_i32_0 = arith.constant 0 : i32
    %c0_i32_1 = arith.constant 0 : i32
    return %c0_i32, %c0_i32_0 : i32, i32
  }
  func.func @transform_2(%arg0: i32) -> (i32, i32) {
    %c0_i32 = arith.constant 0 : i32
    %c0_i32_0 = arith.constant 0 : i32
    %c0_i32_1 = arith.constant 0 : i32
    return %c0_i32, %c0_i32_0 : i32, i32
  }
  func.func @transform_3(%arg0: i32) -> (i32, i32) {
    %c0_i32 = arith.constant 0 : i32
    %c0_i32_0 = arith.constant 0 : i32
    %c0_i32_1 = arith.constant 0 : i32
    return %c0_i32, %c0_i32_0 : i32, i32
  }
  func.func @transform_4(%arg0: i32) -> (i32, i32, i32, i32) {
    %c0_i32 = arith.constant 0 : i32
    %c0_i32_0 = arith.constant 0 : i32
    %c0_i32_1 = arith.constant 0 : i32
    %c0_i32_2 = arith.constant 0 : i32
    %c0_i32_3 = arith.constant 0 : i32
    return %c0_i32, %c0_i32_0, %c0_i32_1, %c0_i32_2 : i32, i32, i32, i32
  }
  func.func @transform_5(%arg0: i32) -> (i32, i32, i32, i32) {
    %c0_i32 = arith.constant 0 : i32
    %c0_i32_0 = arith.constant 0 : i32
    %c0_i32_1 = arith.constant 0 : i32
    %c0_i32_2 = arith.constant 0 : i32
    %c0_i32_3 = arith.constant 0 : i32
    return %c0_i32, %c0_i32_0, %c0_i32_1, %c0_i32_2 : i32, i32, i32, i32
  }
  func.func @transform_6(%arg0: i32) -> (i32, i32, i32, i32) {
    %c0_i32 = arith.constant 0 : i32
    %c0_i32_0 = arith.constant 0 : i32
    %c0_i32_1 = arith.constant 0 : i32
    %c0_i32_2 = arith.constant 0 : i32
    %c0_i32_3 = arith.constant 0 : i32
    return %c0_i32, %c0_i32_0, %c0_i32_1, %c0_i32_2 : i32, i32, i32, i32
  }
  func.func @transform_7(%arg0: i32) -> (i32, i32, i32, i32) {
    %c0_i32 = arith.constant 0 : i32
    %c0_i32_0 = arith.constant 0 : i32
    %c0_i32_1 = arith.constant 0 : i32
    %c0_i32_2 = arith.constant 0 : i32
    %c0_i32_3 = arith.constant 0 : i32
    return %c0_i32, %c0_i32_0, %c0_i32_1, %c0_i32_2 : i32, i32, i32, i32
  }
  func.func @transform_8(%arg0: i32) -> (i32, i32, i32) {
    %c0_i32 = arith.constant 0 : i32
    %c0_i32_0 = arith.constant 0 : i32
    %c0_i32_1 = arith.constant 0 : i32
    return %arg0, %c0_i32, %c0_i32_0 : i32, i32, i32
  }
}

</mosaic_0001>

<bundles_post_ra>
// kernel: electroformer_forward.1
= control target key start
LH: loop header
LB: loop body
LE: loop exit
PB: predicated region body
PF: predicated region fallthrough
CT: control target
= control target key end

     0   :  { %13 = vsyncpa [#allocation3], 0  ;;  %s5352_s0 = inlined_call_operand.vmem [shape: f32[2,8,12], index: 0, kind: input, shape index: {}]   ;;  %s5353_s1 = inlined_call_operand.vmem [shape: f32[32,128], index: 1, kind: input, shape index: {}]   ;;  %s5354_s2 = inlined_call_operand.vmem [shape: bf16[12,32], index: 2, kind: input, shape index: {}]   ;;  %s5355_s3 = inlined_call_operand.vmem [shape: bf16[32,128], index: 3, kind: input, shape index: {}]   ;;  %s5356_s4 = inlined_call_operand.vmem [shape: bf16[2,12,32,8], index: 4, kind: input, shape index: {}]   ;;  %s5357_s5 = inlined_call_operand.vmem [shape: f32[2,12,8,8], index: 5, kind: input, shape index: {}]   ;;  %s5358_s6 = inlined_call_operand.vmem [shape: bf16[2,4,8,32], index: 6, kind: input, shape index: {}]   ;;  %s5359_s7 = inlined_call_operand.vmem [shape: bf16[2,2,64,64], index: 7, kind: input, shape index: {}]   ;;  %s5360_s8 = inlined_call_operand.hbm [shape: f32[2,8,128], index: 8, kind: output, shape index: {}]  }
   0x1   :  { %15 = vsyncpa [#allocation3 + $0x1], 0  ;;  %s4541_s27 = smov 0   ;;  %s4543_s28 = smov 0  }
   0x2   :  { %s4545_s29 = smov 0   ;;  %s4547_s30 = smov 0  }
   0x3 LB: > { %s4562_s9 = sadd.s32 4294967295, %s4491_s30   ;;  %s3550_s10 = sadd.s32 4294967294, %s4491_s30   ;;  %s4491_s30 = sphi %s4547_s30, %s5366_s30   ;;  %s4487_s29 = sphi %s4545_s29, %s5365_s29   ;;  %s4483_s28 = sphi %s4543_s28, %s5364_s28   ;;  %s4479_s27 = sphi %s4541_s27, %s5363_s27  }
   0x4   : > { %s4566_s11 = sadd.s32 1, %s4491_s30   ;;  %s201_s12 = sadd.s32 1, %s4487_s29 }
   0x5   : > { %s198_s13 = ssub.s32 %s4491_s30, %s4566_s11  ;;  %p211_p0 = scmp.ne.s32.totalorder %s4487_s29, %s4483_s28 }
   0x6   : > { %p199_p1 = scmp.eq.s32.totalorder %s198_s13, 0  ;;  %p212_p2 = scmp.eq.s32.totalorder %s4562_s9, 1 }
   0x7   : > { %p217_p3 = scmp.ne.s32.totalorder %s4483_s28, %s4479_s27  ;;  %p218_p4 = scmp.eq.s32.totalorder %s3550_s10, 1 }
   0x8   : > { %s4577_s14 = scalar_select %p199_p1, %s4487_s29, %s201_s12  }
   0x9   : > { %p4579_p5 = por %p212_p2, %p211_p0  ;;  %p4583_p6 = por %p218_p4, %p217_p3 }
   0xa   : > { %p3553_p7 = scmp.ge.s32.totalorder %s4491_s30, 1  ;;  %p264_p8 = scmp.lt.s32.totalorder %s4491_s30, 3 }
   0xc   : > { %p265_p9 = pnand %p3553_p7, %p264_p8 }
   0xd   : > { %vm323_vm0 = vcmask (!%p265_p9), 1045504   ;;  %v4493_v0 = vmov (!%p265_p9), 0.0   ;;  %v4325_v1 = vld [vmem:[%s5354_s2] sm:$0x3f] (!%p265_p9)   ;;  %p297_p10 = scmp.lt.s32.totalorder (!%p265_p9), %s4562_s9, 1  ;;  %vm4494_vm1 = vmmov (!%p265_p9), 0   ;;  %v310_v9 = vlaneseq (!%p265_p9) }
   0xe   : > { %268 = sbr.rel (%p265_p9) target bundleno = 5038 (0x13ae), region = 52  ;;  %3894 = vmatprep.subr.bf16.mxu0 (!%p265_p9), %v4493_v0  ;;  %3900 = vmatprep.subr.bf16.mxu1 (!%p265_p9), %v4493_v0  ;;  %v325_v2 = vsel (!%p265_p9), %vm323_vm0, %v4325_v1, 0  ;;  %vm319_vm2 = vcmask (!%p265_p9), 97280   ;;  %v4326_v5 = vld [vmem:[%s5356_s4] sm:$0xff] (!%p265_p9)   ;;  %v4327_v6 = vld [vmem:[%s5356_s4 + $0x10] sm:$0xff] (!%p265_p9)   ;;  %v4328_v7 = vld [vmem:[%s5356_s4 + $0x8] sm:$0xff] (!%p265_p9)  }
   0xf   : > { %3896 = vmatprep.mubr.msk.bf16.mxu0 (!%p265_p9), %vm4494_vm1, %v4493_v0  ;;  %3904 = vmatprep.mubr.msk.bf16.mxu1 (!%p265_p9), %vm4494_vm1, %v4493_v0  ;;  %v4329_v8 = vld [vmem:[%s5356_s4 + $0x18] sm:$0xff] (!%p265_p9)   ;;  %v4622_v10 = vshrl.u32 (!%p265_p9), %v310_v9, 7  ;;  %v303_v12 = vld [vmem:[%s5353_s1] sm:$0xff] (!%p265_p9)  ;;  %v304_v17 = vld [vmem:[%s5353_s1 + $0x8] sm:$0xff] (!%p265_p9)  ;;  %vm442_vm3 = vcmask (!%p265_p9), 261120   ;;  %vm1070_vm4 = vcmask (!%p265_p9), 64512  }
  0x10   : > { %3895 = vmatpush3.bf16.msra.mxu0 (!%p265_p9), %v325_v2  ;;  %3901 = vmatpush3.bf16.msra.mxu1 (!%p265_p9), %v4326_v5  ;;  %v4330_v22 = vld [vmem:[%s5356_s4 + $0x20] sm:$0xff] (!%p265_p9)   ;;  %v4331_v23 = vld [vmem:[%s5356_s4 + $0x30] sm:$0xff] (!%p265_p9)   ;;  %v4332_v25 = vld [vmem:[%s5356_s4 + $0x28] sm:$0xff] (!%p265_p9)   ;;  %vm1310_vm5 = vcmask (!%p265_p9), 1043456   ;;  %vm1823_vm6 = vcmask (!%p265_p9), 523264   ;;  %s294_s25 = sand.u32 (!%p265_p9), 1, %s4483_s28  }
  0x11   : > { %3908 = vmatprep.subr.bf16.mxu0 (!%p265_p9), %v4493_v0  ;;  %3902 = vmatprep.subr.bf16.mxu1 (!%p265_p9), %v4493_v0  ;;  %v4625_v11 = vsub.s32 (!%p265_p9), 0, %v4622_v10  ;;  %v4333_v26 = vld [vmem:[%s5356_s4 + $0x38] sm:$0xff] (!%p265_p9)   ;;  %v4334_v27 = vld [vmem:[%s5356_s4 + $0x40] sm:$0xff] (!%p265_p9)   ;;  %v4335_v28 = vld [vmem:[%s5356_s4 + $0x50] sm:$0xff] (!%p265_p9)   ;;  %s3554_s26 = sshll.u32 (!%p265_p9), %s294_s25, 3  ;;  %s3750_s13 = sshll.u32 (!%p265_p9), %s4562_s9, 7 }
  0x12   : > { %v4336_v29 = vld [vmem:[%s5356_s4 + $0x48] sm:$0xff] (!%p265_p9)   ;;  %v4337_v30 = vld [vmem:[%s5356_s4 + $0x58] sm:$0xff] (!%p265_p9)   ;;  %v4338_v31 = vld [vmem:[%s5356_s4 + $0x60] sm:$0xff] (!%p265_p9)   ;;  %s296_s17 = scalar_lea.vmem (!%p265_p9), [#allocation2], %s3554_s26  ;;  %s5310_s21 = scalar_lea.hbm (!%p265_p9), %s5360_s8, %s3750_s13 }
  0x13   : > { %v313_v13 = vrot.slane (!%p265_p9), %v303_v12, %v4625_v11  ;;  %v4339_v32 = vld [vmem:[%s5356_s4 + $0x70] sm:$0xff] (!%p265_p9)   ;;  %v4340_v33 = vld [vmem:[%s5356_s4 + $0x68] sm:$0xff] (!%p265_p9)   ;;  %v4341_v34 = vld [vmem:[%s5356_s4 + $0x78] sm:$0xff] (!%p265_p9)   ;;  %s3491_s18 = sshll.u32 (!%p265_p9), %s296_s17, 4  ;;  %s3478_s22 = scalar_lea.sflag (!%p265_p9), [#allocation3], %s294_s25  ;;  %s5312_s18 = int_to_ptr.vmem [resolvable:$true] %s3491_s18 }
  0x14   : > { %3903 = vmatpush3.bf16.msra.mxu1 (!%p265_p9), %v4328_v7  ;;  %v4342_v35 = vld [vmem:[%s5356_s4 + $0x80] sm:$0xff] (!%p265_p9)   ;;  %v4343_v36 = vld [vmem:[%s5356_s4 + $0x90] sm:$0xff] (!%p265_p9)   ;;  %v4344_v37 = vld [vmem:[%s5356_s4 + $0x88] sm:$0xff] (!%p265_p9)  }
  0x15   : > { %s298_s19 = scalar_select %p297_p10, %s4562_s9, 1  ;;  %3916 = vmatprep.subr.bf16.mxu1 %v4493_v0  ;;  %v4345_v38 = vld [vmem:[%s5356_s4 + $0x98] sm:$0xff]   ;;  %v4346_v39 = vld [vmem:[%s5356_s4 + $0xa0] sm:$0xff]   ;;  %v4347_v40 = vld [vmem:[%s5356_s4 + $0xb0] sm:$0xff]  }
  0x16   : > { %v4348_v41 = vld [vmem:[%s5356_s4 + $0xa8] sm:$0xff]   ;;  %v4349_v42 = vld [vmem:[%s5356_s4 + $0xb8] sm:$0xff]   ;;  %v422_v59 = vld [vmem:[%s5357_s5 + $0x20] sm:$0xff]  ;;  %s4429_s9 = scalar_lea.vmem %s5312_s18, 128 }
  0x17   : > { %s3555_s20 = sshll.u32 %s298_s19, 3  ;;  %v423_v60 = vld [vmem:[%s5357_s5 + $0x28] sm:$0xff]  ;;  %v418_v12 = vld [vmem:[%s5357_s5] sm:$0xff]  ;;  %p4430_p11 = scmp.ne.s32.totalorder %s5312_s18, %s4429_s9 }
  0x18   : > { %s300_s23 = scalar_lea.vmem %s5352_s0, %s3555_s20 }
  0x19   : > { %v302_v3 = vld [vmem:[%s300_s23] sm:$0xff]  ;;  %p4431_p12 = pnand %p4430_p11, %p4579_p5  ;;  %s4495_s23 = smov [#allocation2]  }
  0x1a   : > { %v307_v4 = vpack.c.bf16 %v302_v3, %v302_v3  ;;  %s4433_s24 = sshll.u32 %s4495_s23, 4  ;;  %s4434_s24 = int_to_ptr.vmem [resolvable:$false] %s4433_s24 }
  0x1b   : > { %p4432_p13 = pneg %p4431_p12  ;;  %s4435_s26 = scalar_lea.vmem %s4434_s24, 256 }
  0x1c   : > { %3897 = vmatmul.mubr.msk.bf16.vlgmr.msra.gmra.mrb[0].mxu0 %vm319_vm2, %v307_v4  ;;  %p4436_p0 = scmp.lt.s32.totalorder %s5312_s18, %s4434_s24  ;;  %p4437_p1 = scmp.lt.s32.totalorder %s4435_s26, %s4429_s9 }
  0x1d   : > { %3912 = vmatprep.mubr.msk.bf16.mxu0 %vm4494_vm1, %v4493_v0  ;;  %3909 = vmatpush3.bf16.msra.mxu0 %v4327_v6 }
  0x1e   : > { %3910 = vmatprep.subr.bf16.mxu0 %v4493_v0  ;;  %p4438_p2 = por %p4437_p1, %p4436_p0 }
  0x20   : > { %p4439_p3 = pnand %p4438_p2, %p4432_p13 }
  0x21   : > { %3911 = vmatpush3.bf16.msra.mxu0 %v4329_v8 }
  0x22   : > { %3924 = vmatprep.subr.bf16.mxu0 %v4493_v0 }
  0xef   : > { %v361_v14 = vpop.f32.mrb[0].mxu0 }
  0xf0   : > { %v362_v15 = vadd.f32 %v361_v14, %v313_v13  ;;  %v3898_v16 = vpop.f32.mrb[1].mxu0  ;;  %v419_v13 = vld [vmem:[%s5357_s5 + $0x8] sm:$0xff] }
  0xf1   : > { %v364_v18 = vpop.f32.mrb[2].mxu0  ;;  %v424_v16 = vld [vmem:[%s5357_s5 + $0x30] sm:$0xff] }
  0xf2   : > { %v367_v19 = vmul.f32 5.656854, %v362_v15  ;;  %v3899_v20 = vpop.f32.mrb[3].mxu0 }
  0xf4   : > { %v4634_v21 = vadd.f32 %v367_v19, %v304_v17  ;;  %v425_v17 = vld [vmem:[%s5357_s5 + $0x38] sm:$0xff] }
  0xf6   : > { %v4644_v24 = vpack.c.bf16 %v4634_v21, %v4634_v21 }
  0xf8   : > { %3905 = vmatmul.mubr.msk.bf16.vlgmr.msra.gmra.mrb[0].mxu1 %vm442_vm3, %v4644_v24  ;;  %3913 = vmatmul.mubr.msk.bf16.vlgmr.msra.gmra.mrb[4].mxu0 %vm442_vm3, %v4644_v24 }
  0xf9   : > { %3917 = vmatpush3.bf16.msra.mxu1 %v4330_v22  ;;  %3925 = vmatpush3.bf16.msra.mxu0 %v4331_v23 }
  0xfa   : > { %3918 = vmatprep.subr.bf16.mxu1 %v4493_v0  ;;  %3926 = vmatprep.subr.bf16.mxu0 %v4493_v0 }
  0xfb   : > { %3920 = vmatprep.mubr.msk.bf16.mxu1 %vm4494_vm1, %v4493_v0  ;;  %3928 = vmatprep.mubr.msk.bf16.mxu0 %vm4494_vm1, %v4493_v0 }
  0xfd   : > { %3919 = vmatpush3.bf16.msra.mxu1 %v4332_v25  ;;  %3927 = vmatpush3.bf16.msra.mxu0 %v4333_v26 }
  0xfe   : > { %3932 = vmatprep.subr.bf16.mxu1 %v4493_v0  ;;  %3940 = vmatprep.subr.bf16.mxu0 %v4493_v0 }
 0x100   : > { %3921 = vmatmul.mubr.msk.bf16.vlgmr.msra.gmra.mrb[4].mxu1 %vm442_vm3, %v4644_v24  ;;  %3929 = vmatmul.mubr.msk.bf16.vlgmr.msra.gmra.mrb[8].mxu0 %vm442_vm3, %v4644_v24 }
 0x101   : > { %3933 = vmatpush3.bf16.msra.mxu1 %v4334_v27  ;;  %3941 = vmatpush3.bf16.msra.mxu0 %v4335_v28 }
 0x102   : > { %3934 = vmatprep.subr.bf16.mxu1 %v4493_v0  ;;  %3942 = vmatprep.subr.bf16.mxu0 %v4493_v0 }
 0x103   : > { %3936 = vmatprep.mubr.msk.bf16.mxu1 %vm4494_vm1, %v4493_v0  ;;  %3944 = vmatprep.mubr.msk.bf16.mxu0 %vm4494_vm1, %v4493_v0 }
 0x105   : > { %3935 = vmatpush3.bf16.msra.mxu1 %v4336_v29  ;;  %3943 = vmatpush3.bf16.msra.mxu0 %v4337_v30 }
 0x106   : > { %3948 = vmatprep.subr.bf16.mxu1 %v4493_v0  ;;  %3956 = vmatprep.subr.bf16.mxu0 %v4493_v0 }
 0x108   : > { %3937 = vmatmul.mubr.msk.bf16.vlgmr.msra.gmra.mrb[8].mxu1 %vm442_vm3, %v4644_v24  ;;  %3945 = vmatmul.mubr.msk.bf16.vlgmr.msra.gmra.mrb[12].mxu0 %vm442_vm3, %v4644_v24 }
 0x109   : > { %3949 = vmatpush3.bf16.msra.mxu1 %v4338_v31  ;;  %3957 = vmatpush3.bf16.msra.mxu0 %v4339_v32 }
 0x10a   : > { %3950 = vmatprep.subr.bf16.mxu1 %v4493_v0  ;;  %3958 = vmatprep.subr.bf16.mxu0 %v4493_v0 }
 0x10b   : > { %3952 = vmatprep.mubr.msk.bf16.mxu1 %vm4494_vm1, %v4493_v0  ;;  %3960 = vmatprep.mubr.msk.bf16.mxu0 %vm4494_vm1, %v4493_v0 }
 0x10d   : > { %3951 = vmatpush3.bf16.msra.mxu1 %v4340_v33  ;;  %3959 = vmatpush3.bf16.msra.mxu0 %v4341_v34 }
 0x10e   : > { %3964 = vmatprep.subr.bf16.mxu1 %v4493_v0  ;;  %3972 = vmatprep.subr.bf16.mxu0 %v4493_v0 }
 0x110   : > { %3953 = vmatmul.mubr.msk.bf16.vlgmr.msra.gmra.mrb[12].mxu1 %vm442_vm3, %v4644_v24  ;;  %3961 = vmatmul.mubr.msk.bf16.vlgmr.msra.gmra.mrb[16].mxu0 %vm442_vm3, %v4644_v24 }
 0x111   : > { %3965 = vmatpush3.bf16.msra.mxu1 %v4342_v35  ;;  %3973 = vmatpush3.bf16.msra.mxu0 %v4343_v36  ;;  %v420_v35 = vld [vmem:[%s5357_s5 + $0x10] sm:$0xff]  ;;  %v421_v36 = vld [vmem:[%s5357_s5 + $0x18] sm:$0xff] }
 0x112   : > { %3966 = vmatprep.subr.bf16.mxu1 %v4493_v0  ;;  %3974 = vmatprep.subr.bf16.mxu0 %v4493_v0 }
 0x113   : > { %3968 = vmatprep.mubr.msk.bf16.mxu1 %vm4494_vm1, %v4493_v0  ;;  %3976 = vmatprep.mubr.msk.bf16.mxu0 %vm4494_vm1, %v4493_v0 }
 0x115   : > { %3967 = vmatpush3.bf16.msra.mxu1 %v4344_v37  ;;  %3975 = vmatpush3.bf16.msra.mxu0 %v4345_v38 }
 0x116   : > { %3980 = vmatprep.subr.bf16.mxu1 %v4493_v0  ;;  %3988 = vmatprep.subr.bf16.mxu0 %v4493_v0 }
 0x118   : > { %3969 = vmatmul.mubr.msk.bf16.vlgmr.msra.gmra.mrb[16].mxu1 %vm442_vm3, %v4644_v24  ;;  %3977 = vmatmul.mubr.msk.bf16.vlgmr.msra.gmra.mrb[20].mxu0 %vm442_vm3, %v4644_v24 }
 0x119   : > { %3981 = vmatpush3.bf16.msra.mxu1 %v4346_v39  ;;  %3989 = vmatpush3.bf16.msra.mxu0 %v4347_v40  ;;  %v426_v39 = vld [vmem:[%s5357_s5 + $0x40] sm:$0xff]  ;;  %v427_v40 = vld [vmem:[%s5357_s5 + $0x48] sm:$0xff] }
 0x11a   : > { %3982 = vmatprep.subr.bf16.mxu1 %v4493_v0  ;;  %3990 = vmatprep.subr.bf16.mxu0 %v4493_v0 }
 0x11b   : > { %3984 = vmatprep.mubr.msk.bf16.mxu1 %vm4494_vm1, %v4493_v0  ;;  %3992 = vmatprep.mubr.msk.bf16.mxu0 %vm4494_vm1, %v4493_v0 }
 0x11d   : > { %3983 = vmatpush3.bf16.msra.mxu1 %v4348_v41  ;;  %3991 = vmatpush3.bf16.msra.mxu0 %v4349_v42 }
 0x11e   : > { %3996 = vmatprep.subr.bf16.mxu1 %v4493_v0  ;;  %4002 = vmatprep.subr.bf16.mxu0 %v4493_v0 }
 0x120   : > { %3985 = vmatmul.mubr.msk.bf16.vlgmr.msra.gmra.mrb[20].mxu1 %vm442_vm3, %v4644_v24  ;;  %3993 = vmatmul.mubr.msk.bf16.vlgmr.msra.gmra.mrb[24].mxu0 %vm442_vm3, %v4644_v24 }
 0x121   : > { %3998 = vmatprep.mubr.msk.bf16.mxu1 %vm4494_vm1, %v4493_v0  ;;  %4004 = vmatprep.mubr.msk.bf16.mxu0 %vm4494_vm1, %v4493_v0 }
 0x1cb   : > { %v480_v43 = vpop.f32.mrb[0].mxu1  ;;  %v532_v44 = vpop.f32.mrb[4].mxu0 }
 0x1cc   : > { %v3906_v45 = vpop.f32.mrb[1].mxu1  ;;  %v3914_v46 = vpop.f32.mrb[5].mxu0  ;;  %v481_v18 = vadd.f32 %v480_v43, %v418_v12  ;;  %v533_v19 = vadd.f32 %v532_v44, %v419_v13 }
 0x1cd   : > { %v483_v47 = vpop.f32.mrb[2].mxu1  ;;  %v535_v48 = vpop.f32.mrb[6].mxu0 }
 0x1ce   : > { %v3907_v49 = vpop.f32.mrb[3].mxu1  ;;  %v3915_v50 = vpop.f32.mrb[7].mxu0  ;;  %v1058_v29 = vpack.c.bf16 %v481_v18, %v481_v18  ;;  %v1059_v30 = vpack.c.bf16 %v533_v19, %v533_v19 }
 0x1d3   : > { %v584_v51 = vpop.f32.mrb[4].mxu1  ;;  %v636_v52 = vpop.f32.mrb[8].mxu0 }
 0x1d4   : > { %v3922_v53 = vpop.f32.mrb[5].mxu1  ;;  %v3930_v54 = vpop.f32.mrb[9].mxu0  ;;  %v585_v41 = vadd.f32 %v584_v51, %v420_v35  ;;  %v637_v42 = vadd.f32 %v636_v52, %v421_v36 }
 0x1d5   : > { %v587_v55 = vpop.f32.mrb[6].mxu1  ;;  %v639_v56 = vpop.f32.mrb[10].mxu0 }
 0x1d6   : > { %v3923_v57 = vpop.f32.mrb[7].mxu1  ;;  %v3931_v58 = vpop.f32.mrb[11].mxu0  ;;  %v1060_v51 = vpack.c.bf16 %v585_v41, %v585_v41  ;;  %v1061_v52 = vpack.c.bf16 %v637_v42, %v637_v42 }
 0x1db   : > { %v688_v61 = vpop.f32.mrb[8].mxu1  ;;  %v740_v62 = vpop.f32.mrb[12].mxu0 }
 0x1dc   : > { %v689_v63 = vadd.f32 %v688_v61, %v422_v59  ;;  %v741_v1 = vadd.f32 %v740_v62, %v423_v60  ;;  %v3938_v2 = vpop.f32.mrb[9].mxu1  ;;  %v3946_v3 = vpop.f32.mrb[13].mxu0 }
 0x1dd   : > { %v691_v4 = vpop.f32.mrb[10].mxu1  ;;  %v743_v5 = vpop.f32.mrb[14].mxu0 }
 0x1de   : > { %v1062_v6 = vpack.c.bf16 %v689_v63, %v689_v63  ;;  %v1063_v7 = vpack.c.bf16 %v741_v1, %v741_v1  ;;  %v3939_v8 = vpop.f32.mrb[11].mxu1  ;;  %v3947_v9 = vpop.f32.mrb[15].mxu0 }
 0x1e0   : > { %v1075_v14 = vsel %vm1070_vm4, %v1062_v6, 0  ;;  %v1121_v15 = vsel %vm1070_vm4, %v1063_v7, 0 }
 0x1e1   : > { %3997 = vmatpush3.bf16.xpose.msra.mxu1 %v1075_v14  ;;  %4003 = vmatpush3.bf16.xpose.msra.mxu0 %v1121_v15 }
 0x1e2   : > { %4008 = vmatprep.subr.bf16.mxu1 %v4493_v0  ;;  %4014 = vmatprep.subr.bf16.mxu0 %v4493_v0 }
 0x1e3   : > { %v792_v20 = vpop.f32.mrb[12].mxu1  ;;  %v844_v22 = vpop.f32.mrb[16].mxu0 }
 0x1e4   : > { %v793_v23 = vadd.f32 %v792_v20, %v424_v16  ;;  %v845_v24 = vadd.f32 %v844_v22, %v425_v17  ;;  %v3954_v25 = vpop.f32.mrb[13].mxu1  ;;  %v3962_v26 = vpop.f32.mrb[17].mxu0 }
 0x1e5   : > { %v795_v27 = vpop.f32.mrb[14].mxu1  ;;  %v847_v28 = vpop.f32.mrb[18].mxu0 }
 0x1e6   : > { %v1064_v31 = vpack.c.bf16 %v793_v23, %v793_v23  ;;  %v1065_v32 = vpack.c.bf16 %v845_v24, %v845_v24  ;;  %v3955_v33 = vpop.f32.mrb[15].mxu1  ;;  %v3963_v34 = vpop.f32.mrb[19].mxu0 }
 0x1e8   : > { %v1167_v37 = vsel %vm1070_vm4, %v1064_v31, 0  ;;  %v1213_v38 = vsel %vm1070_vm4, %v1065_v32, 0  ;;  %3999 = vmatmul.mubr.msk.bf16.vlgmr.msra.gmra.mrb[24].mxu1 %vm1070_vm4, %v1058_v29  ;;  %4005 = vmatmul.mubr.msk.bf16.vlgmr.msra.gmra.mrb[28].mxu0 %vm1070_vm4, %v1059_v30 }
 0x1e9   : > { %4009 = vmatpush3.bf16.xpose.msra.mxu1 %v1167_v37  ;;  %4015 = vmatpush3.bf16.xpose.msra.mxu0 %v1213_v38 }
 0x1ea   : > { %4010 = vmatprep.mubr.msk.bf16.mxu1 %vm4494_vm1, %v4493_v0  ;;  %4016 = vmatprep.mubr.msk.bf16.mxu0 %vm4494_vm1, %v4493_v0 }
 0x1eb   : > { %v896_v43 = vpop.f32.mrb[16].mxu1  ;;  %v948_v44 = vpop.f32.mrb[20].mxu0  ;;  %4020 = vmatprep.subr.bf16.mxu1 %v4493_v0  ;;  %4026 = vmatprep.subr.bf16.mxu0 %v4493_v0 }
 0x1ec   : > { %v897_v45 = vadd.f32 %v896_v43, %v426_v39  ;;  %v949_v46 = vadd.f32 %v948_v44, %v427_v40  ;;  %v3970_v47 = vpop.f32.mrb[17].mxu1  ;;  %v3978_v48 = vpop.f32.mrb[21].mxu0 }
 0x1ed   : > { %v899_v49 = vpop.f32.mrb[18].mxu1  ;;  %v951_v50 = vpop.f32.mrb[22].mxu0 }
 0x1ee   : > { %v1066_v53 = vpack.c.bf16 %v897_v45, %v897_v45  ;;  %v1067_v54 = vpack.c.bf16 %v949_v46, %v949_v46  ;;  %v3971_v55 = vpop.f32.mrb[19].mxu1  ;;  %v3979_v56 = vpop.f32.mrb[23].mxu0 }
 0x1ef   : > { %v429_v56 = vld [vmem:[%s5357_s5 + $0x58] sm:$0xff] }
 0x1f0   : > { %v1312_v57 = vsel %vm1310_vm5, %v1066_v53, 0  ;;  %v1358_v58 = vsel %vm1310_vm5, %v1067_v54, 0  ;;  %4011 = vmatmul.mubr.msk.bf16.vlgmr.msra.gmra.mrb[28].mxu1 %vm1070_vm4, %v1060_v51  ;;  %4017 = vmatmul.mubr.msk.bf16.vlgmr.msra.gmra.mrb[32].mxu0 %vm1070_vm4, %v1061_v52  ;;  %v428_v53 = vld [vmem:[%s5357_s5 + $0x50] sm:$0xff] }
 0x1f1   : > { %4021 = vmatpush3.bf16.msra.mxu1 %v1312_v57  ;;  %4027 = vmatpush3.bf16.msra.mxu0 %v1358_v58 }
 0x1f2   : > { %4022 = vmatprep.mubr.msk.bf16.mxu1 %vm4494_vm1, %v4493_v0  ;;  %4032 = vmatprep.subr.bf16.mxu1 %v4493_v0 }
 0x1f3   : > { %v4819_v59 = vpop.f32.mrb[20].mxu1  ;;  %v4821_v60 = vpop.f32.mrb[24].mxu0  ;;  %4028 = vmatprep.mubr.msk.bf16.mxu0 %vm4494_vm1, %v4493_v0  ;;  %4038 = vmatprep.subr.bf16.mxu0 %v4493_v0 }
 0x1f4   : > { %v3986_v61 = vpop.f32.mrb[21].mxu1  ;;  %v3994_v62 = vpop.f32.mrb[25].mxu0  ;;  %v1001_v54 = vadd.f32 %v4819_v59, %v428_v53 }
 0x1f5   : > { %v1003_v63 = vpop.f32.mrb[22].mxu1  ;;  %v1055_v1 = vpop.f32.mrb[26].mxu0  ;;  %v1053_v61 = vadd.f32 %v4821_v60, %v429_v56  ;;  %v1496_v60 = vld [vmem:[%s5358_s6] sm:$0xf] }
 0x1f6   : > { %v3987_v2 = vpop.f32.mrb[23].mxu1  ;;  %v3995_v3 = vpop.f32.mrb[27].mxu0  ;;  %v1068_v58 = vpack.c.bf16 %v1001_v54, %v1001_v54 }
 0x1f8   : > { %v1404_v3 = vsel %vm1310_vm5, %v1068_v58, 0 }
 0x2bb   : > { %v1111_v4 = vpop.f32.mrb[24].mxu1  ;;  %v1157_v5 = vpop.f32.mrb[28].mxu0 }
 0x2bc   : > { %v1255_v6 = vmul.f32 0.35355338, %v1111_v4  ;;  %v4000_v7 = vpop.f32.mrb[25].mxu1  ;;  %v4006_v8 = vpop.f32.mrb[29].mxu0  ;;  %v1256_v13 = vmul.f32 0.35355338, %v1157_v5  ;;  %v1069_v4 = vpack.c.bf16 %v1053_v61, %v1053_v61 }
 0x2bd   : > { %v1114_v9 = vpop.f32.mrb[26].mxu1  ;;  %v1160_v12 = vpop.f32.mrb[30].mxu0 }
 0x2be   : > { %v4001_v14 = vpop.f32.mrb[27].mxu1  ;;  %v4007_v15 = vpop.f32.mrb[31].mxu0  ;;  %v1259_v16 = vsel %vm1070_vm4, %v1255_v6, -inf  ;;  %v1262_v17 = vsel %vm1070_vm4, %v1256_v13, -inf  ;;  %v1450_v7 = vsel %vm1310_vm5, %v1069_v4, 0  ;;  %v1504_v12 = vsel %vm1310_vm5, %v1496_v60, 0 }
 0x2bf   : > { %1260 = vmax.xlane.f32.xlu0 %v1259_v16  ;;  %v1497_v16 = vld [vmem:[%s5358_s6 + $0x4] sm:$0xf] }
 0x2c3   : > { %v1203_v18 = vpop.f32.mrb[28].mxu1  ;;  %1263 = vmax.xlane.f32.xlu0 %v1262_v17  ;;  %v1249_v19 = vpop.f32.mrb[32].mxu0  ;;  %v1550_v17 = vsel %vm1310_vm5, %v1497_v16, 0  ;;  %v4351_v16 = vld [vmem:[%s5359_s7 + $0x8] sm:$0xff]  }
 0x2c4   : > { %v1257_v20 = vmul.f32 0.35355338, %v1203_v18  ;;  %v4012_v22 = vpop.f32.mrb[29].mxu1  ;;  %v4018_v23 = vpop.f32.mrb[33].mxu0  ;;  %v1258_v26 = vmul.f32 0.35355338, %v1249_v19 }
 0x2c5   : > { %v1206_v24 = vpop.f32.mrb[30].mxu1  ;;  %v1252_v25 = vpop.f32.mrb[34].mxu0  ;;  %v1498_v18 = vld [vmem:[%s5358_s6 + $0x8] sm:$0xf] }
 0x2c6   : > { %v4013_v27 = vpop.f32.mrb[31].mxu1  ;;  %v4019_v28 = vpop.f32.mrb[35].mxu0  ;;  %v1265_v29 = vsel %vm1070_vm4, %v1257_v20, -inf  ;;  %v1268_v30 = vsel %vm1070_vm4, %v1258_v26, -inf  ;;  %v1596_v23 = vsel %vm1310_vm5, %v1498_v18, 0 }
 0x2c7   : > { %1266 = vmax.xlane.f32.xlu1 %v1265_v29  ;;  %v1499_v25 = vld [vmem:[%s5358_s6 + $0xc] sm:$0xf] }
 0x2cb   : > { %1269 = vmax.xlane.f32.xlu1 %v1268_v30  ;;  %v1642_v30 = vsel %vm1310_vm5, %v1499_v25, 0 }
 0x34c   : > { %v1261_v31 = vpop.xlane.xlu0 %1260 }
 0x34d   : > { %v1271_v32 = vsub.f32 %v1255_v6, %v1261_v31 }
 0x34f   : > { %v1275_v33 = vmul.f32 1.442695, %v1271_v32 }
 0x350   : > { %v1264_v34 = vpop.xlane.xlu0 %1263 }
 0x351   : > { %4388 = vpow2.f32 %v1275_v33  ;;  %v1272_v35 = vsub.f32 %v1256_v13, %v1264_v34 }
 0x353   : > { %v1277_v36 = vmul.f32 1.442695, %v1272_v35 }
 0x354   : > { %v1267_v37 = vpop.xlane.xlu1 %1266 }
 0x355   : > { %4390 = vpow2.f32 %v1277_v36  ;;  %v1273_v38 = vsub.f32 %v1257_v20, %v1267_v37 }
 0x357   : > { %v1279_v39 = vmul.f32 1.442695, %v1273_v38 }
 0x358   : > { %v1270_v40 = vpop.xlane.xlu1 %1269 }
 0x359   : > { %4392 = vpow2.f32 %v1279_v39  ;;  %v1274_v41 = vsub.f32 %v1258_v26, %v1270_v40 }
 0x35b   : > { %v4389_v42 = vpop.eup %4388  ;;  %v1281_v43 = vmul.f32 1.442695, %v1274_v41 }
 0x35c   : > { %v1283_v44 = vsel %vm1070_vm4, %v4389_v42, 0.0 }
 0x35d   : > { %4394 = vpow2.f32 %v1281_v43  ;;  %1284 = vadd.xlane.f32.xlu0 %v1283_v44 }
 0x35f   : > { %v4391_v45 = vpop.eup %4390 }
 0x360   : > { %v1286_v46 = vsel %vm1070_vm4, %v4391_v45, 0.0 }
 0x361   : > { %1287 = vadd.xlane.f32.xlu1 %v1286_v46 }
 0x363   : > { %v4393_v47 = vpop.eup %4392 }
 0x364   : > { %v1289_v48 = vsel %vm1070_vm4, %v4393_v47, 0.0 }
 0x365   : > { %1290 = vadd.xlane.f32.xlu0 %v1289_v48 }
 0x367   : > { %v4395_v49 = vpop.eup %4394 }
 0x368   : > { %v1292_v50 = vsel %vm1070_vm4, %v4395_v49, 0.0 }
 0x369   : > { %1293 = vadd.xlane.f32.xlu1 %v1292_v50 }
 0x3ea   : > { %v1285_v51 = vpop.xlane.xlu0 %1284 }
 0x3eb   : > { %4396 = vrcp.f32 %v1285_v51 }
 0x3ee   : > { %v1288_v52 = vpop.xlane.xlu1 %1287 }
 0x3ef   : > { %4398 = vrcp.f32 %v1288_v52 }
 0x3f2   : > { %v1291_v55 = vpop.xlane.xlu0 %1290 }
 0x3f3   : > { %4400 = vrcp.f32 %v1291_v55 }
 0x3f5   : > { %v4397_v57 = vpop.eup %4396 }
 0x3f6   : > { %v1299_v62 = vmul.f32 %v4397_v57, %v4389_v42  ;;  %v1294_v63 = vpop.xlane.xlu1 %1293  ;;  %v4896_v57 = vld [vmem:[%s5353_s1 + $0x10] sm:$0xff] }
 0x3f7   : > { %4402 = vrcp.f32 %v1294_v63 }
 0x3f8   : > { %v1303_v1 = vpack.c.bf16 %v1299_v62, %v1299_v62 }
 0x3f9   : > { %v4399_v2 = vpop.eup %4398 }
 0x3fa   : > { %v1300_v5 = vmul.f32 %v4399_v2, %v4391_v45  ;;  %4023 = vmatmul.mubr.msk.bf16.vlgmr.msra.gmra.mrb[32].mxu1 %vm1070_vm4, %v1303_v1  ;;  %v1694_v1 = vrot.slane %v4896_v57, %v4625_v11 }
 0x3fb   : > { %4033 = vmatpush3.bf16.msra.mxu1 %v1404_v3  ;;  %4034 = vmatprep.mubr.msk.bf16.mxu1 %vm4494_vm1, %v4493_v0 }
 0x3fc   : > { %v1304_v59 = vpack.c.bf16 %v1300_v5, %v1300_v5  ;;  %4044 = vmatprep.subr.bf16.mxu1 %v4493_v0 }
 0x3fd   : > { %v4401_v6 = vpop.eup %4400 }
 0x3fe   : > { %v1301_v8 = vmul.f32 %v4401_v6, %v4393_v47  ;;  %4029 = vmatmul.mubr.msk.bf16.vlgmr.msra.gmra.mrb[36].mxu0 %vm1070_vm4, %v1304_v59 }
 0x3ff   : > { %4039 = vmatpush3.bf16.msra.mxu0 %v1450_v7  ;;  %4040 = vmatprep.mubr.msk.bf16.mxu0 %vm4494_vm1, %v4493_v0 }
 0x400   : > { %v1305_v9 = vpack.c.bf16 %v1301_v8, %v1301_v8  ;;  %4050 = vmatprep.subr.bf16.mxu0 %v4493_v0 }
 0x401   : > { %v4403_v13 = vpop.eup %4402 }
 0x402   : > { %v1302_v14 = vmul.f32 %v4403_v13, %v4395_v49  ;;  %4035 = vmatmul.mubr.msk.bf16.vlgmr.msra.gmra.mrb[36].mxu1 %vm1070_vm4, %v1305_v9 }
 0x403   : > { %4045 = vmatpush3.bf16.msra.mxu1 %v1504_v12  ;;  %4046 = vmatprep.mubr.msk.bf16.mxu1 %vm4494_vm1, %v4493_v0 }
 0x404   : > { %v1306_v15 = vpack.c.bf16 %v1302_v14, %v1302_v14  ;;  %4056 = vmatprep.subr.bf16.mxu1 %v4493_v0 }
 0x406   : > { %4041 = vmatmul.mubr.msk.bf16.vlgmr.msra.gmra.mrb[40].mxu0 %vm1070_vm4, %v1306_v15  ;;  %v4350_v15 = vld [vmem:[%s5359_s7] sm:$0xff]  }
 0x407   : > { %4052 = vmatprep.mubr.msk.bf16.mxu0 %vm4494_vm1, %v4493_v0  ;;  %4051 = vmatpush3.bf16.msra.mxu0 %v1550_v17  ;;  %v4353_v17 = vld [vmem:[%s5359_s7 + $0x28] sm:$0xff]  }
 0x408   : > { %4062 = vmatprep.subr.bf16.mxu0 %v4493_v0 }
 0x4cd   : > { %v1348_v19 = vpop.f32.mrb[32].mxu1 }
 0x4ce   : > { %v1492_v20 = vpack.c.bf16 %v1348_v19, %v1348_v19  ;;  %v4024_v22 = vpop.f32.mrb[33].mxu1 }
 0x4cf   : > { %v1351_v24 = vpop.f32.mrb[34].mxu1  ;;  %v4921_v22 = vsub.s32 1, %v4622_v10 }
 0x4d0   : > { %v4025_v26 = vpop.f32.mrb[35].mxu1  ;;  %4047 = vmatmul.mubr.msk.bf16.vlgmr.msra.gmra.mrb[40].mxu1 %vm1070_vm4, %v1492_v20 }
 0x4d1   : > { %v1394_v27 = vpop.f32.mrb[36].mxu0  ;;  %4057 = vmatpush3.bf16.msra.mxu1 %v1596_v23  ;;  %4058 = vmatprep.mubr.msk.bf16.mxu1 %vm4494_vm1, %v4493_v0  ;;  %v1718_v23 = vsub.s32 2, %v4622_v10  ;;  %v1714_v24 = vrot.slane %v4896_v57, %v4921_v22 }
 0x4d2   : > { %v1493_v28 = vpack.c.bf16 %v1394_v27, %v1394_v27  ;;  %v4030_v29 = vpop.f32.mrb[37].mxu0  ;;  %4068 = vmatprep.subr.bf16.mxu1 %v4493_v0 }
 0x4d3   : > { %v1397_v31 = vpop.f32.mrb[38].mxu0  ;;  %v1719_v27 = vrot.slane %v4896_v57, %v1718_v23 }
 0x4d4   : > { %v4031_v32 = vpop.f32.mrb[39].mxu0  ;;  %4053 = vmatmul.mubr.msk.bf16.vlgmr.msra.gmra.mrb[44].mxu0 %vm1070_vm4, %v1493_v28  ;;  %v4354_v31 = vld [vmem:[%s5359_s7 + $0x30] sm:$0xff]  }
 0x4d5   : > { %v1440_v33 = vpop.f32.mrb[36].mxu1  ;;  %4063 = vmatpush3.bf16.msra.mxu0 %v1642_v30  ;;  %4064 = vmatprep.mubr.msk.bf16.mxu0 %vm4494_vm1, %v4493_v0  ;;  %v4355_v32 = vld [vmem:[%s5359_s7 + $0x38] sm:$0xff]  }
 0x4d6   : > { %v1494_v34 = vpack.c.bf16 %v1440_v33, %v1440_v33  ;;  %v4036_v35 = vpop.f32.mrb[37].mxu1  ;;  %4076 = vmatprep.subr.bf16.mxu0 %v4493_v0  ;;  %v1736_v33 = vsub.s32 5, %v4622_v10 }
 0x4d7   : > { %v1443_v36 = vpop.f32.mrb[38].mxu1 }
 0x4d8   : > { %v4037_v37 = vpop.f32.mrb[39].mxu1  ;;  %4059 = vmatmul.mubr.msk.bf16.vlgmr.msra.gmra.mrb[44].mxu1 %vm1070_vm4, %v1494_v34  ;;  %v1737_v34 = vrot.slane %v4896_v57, %v1736_v33 }
 0x4d9   : > { %v1486_v38 = vpop.f32.mrb[40].mxu0  ;;  %4072 = vmatprep.mubr.msk.bf16.mxu1 %vm4494_vm1, %v4493_v0  ;;  %4069 = vmatpush3.bf16.msra.mxu1 %v4350_v15  ;;  %v4364_v15 = vld [vmem:[%s5356_s4 + $0xf0] sm:$0xff]  }
 0x4da   : > { %v1495_v39 = vpack.c.bf16 %v1486_v38, %v1486_v38  ;;  %v4042_v40 = vpop.f32.mrb[41].mxu0  ;;  %4070 = vmatprep.subr.bf16.mxu1 %v4493_v0 }
 0x4db   : > { %v1489_v41 = vpop.f32.mrb[42].mxu0 }
 0x4dc   : > { %v4043_v42 = vpop.f32.mrb[43].mxu0  ;;  %4065 = vmatmul.mubr.msk.bf16.vlgmr.msra.gmra.mrb[48].mxu0 %vm1070_vm4, %v1495_v39 }
 0x4dd   : > { %4084 = vmatprep.mubr.msk.bf16.mxu0 %vm4494_vm1, %v4493_v0  ;;  %4071 = vmatpush3.bf16.msra.mxu1 %v4351_v16  ;;  %v1797_v42 = vsub.s32 6, %v4622_v10  ;;  %v4365_v16 = vld [vmem:[%s5356_s4 + $0x120] sm:$0xff]  }
 0x4de   : > { %4088 = vmatprep.subr.bf16.mxu1 %v4493_v0 }
 0x5a3   : > { %v1540_v43 = vpop.f32.mrb[40].mxu1 }
 0x5a4   : > { %v4048_v44 = vpop.f32.mrb[41].mxu1  ;;  %v1684_v48 = vsel %vm442_vm3, %v1540_v43, 0.0  ;;  %v1798_v43 = vrot.slane %v4896_v57, %v1797_v42 }
 0x5a5   : > { %v1543_v45 = vpop.f32.mrb[42].mxu1 }
 0x5a6   : > { %v4049_v46 = vpop.f32.mrb[43].mxu1 }
 0x5a7   : > { %v1586_v47 = vpop.f32.mrb[44].mxu0 }
 0x5a8   : > { %v1685_v49 = vsel %vm442_vm3, %v1586_v47, 0.0  ;;  %v4054_v50 = vpop.f32.mrb[45].mxu0 }
 0x5a9   : > { %v1686_v51 = vadd.f32 %v1685_v49, %v1684_v48  ;;  %v1589_v52 = vpop.f32.mrb[46].mxu0 }
 0x5aa   : > { %v4055_v53 = vpop.f32.mrb[47].mxu0 }
 0x5ab   : > { %v1632_v54 = vpop.f32.mrb[44].mxu1 }
 0x5ac   : > { %v1687_v55 = vsel %vm442_vm3, %v1632_v54, 0.0  ;;  %v4060_v56 = vpop.f32.mrb[45].mxu1 }
 0x5ad   : > { %v1688_v58 = vadd.f32 %v1687_v55, %v1686_v51  ;;  %v1635_v61 = vpop.f32.mrb[46].mxu1  ;;  %v4356_v56 = vld [vmem:[%s5356_s4 + $0xc0] sm:$0xff]  }
 0x5ae   : > { %v4061_v62 = vpop.f32.mrb[47].mxu1  ;;  %v4358_v61 = vld [vmem:[%s5356_s4 + $0xc8] sm:$0xff]  }
 0x5af   : > { %v1678_v63 = vpop.f32.mrb[48].mxu0  ;;  %v4359_v62 = vld [vmem:[%s5356_s4 + $0xe8] sm:$0xff]  }
 0x5b0   : > { %v1689_v2 = vsel %vm442_vm3, %v1678_v63, 0.0  ;;  %v4066_v3 = vpop.f32.mrb[49].mxu0 }
 0x5b1   : > { %v1690_v4 = vadd.f32 %v1689_v2, %v1688_v58  ;;  %v1681_v5 = vpop.f32.mrb[50].mxu0  ;;  %v4357_v58 = vld [vmem:[%s5356_s4 + $0xe0] sm:$0xff]   ;;  %v1883_v3 = vsub.s32 3, %v4622_v10 }
 0x5b2   : > { %v4067_v59 = vpop.f32.mrb[51].mxu0 }
 0x5b3   : > { %v1695_v6 = vadd.f32 %v1694_v1, %v1690_v4  ;;  %v1888_v4 = vsub.s32 4, %v4622_v10  ;;  %v1884_v5 = vrot.slane %v4896_v57, %v1883_v3 }
 0x5b5   : > { %v1696_v60 = vadd.f32 %v1695_v6, %v4634_v21  ;;  %v4352_v21 = vld [vmem:[%s5359_s7 + $0x20] sm:$0xff]   ;;  %v1889_v6 = vrot.slane %v4896_v57, %v1888_v4  ;;  %v4362_v57 = vld [vmem:[%s5356_s4 + $0xd8] sm:$0xff]  }
 0x5b6   : > { %4077 = vmatpush3.bf16.msra.mxu0 %v4352_v21  ;;  %v4366_v21 = vld [vmem:[%s5356_s4 + $0xf8] sm:$0xff]  }
 0x5b7   : > { %v1697_v7 = vsel %vm442_vm3, %v1696_v60, 0.0  ;;  %4078 = vmatprep.subr.bf16.mxu0 %v4493_v0 }
 0x5b8   : > { %1698 = vadd.xlane.f32.xlu0 %v1697_v7 }
 0x5ba   : > { %4079 = vmatpush3.bf16.msra.mxu0 %v4353_v17  ;;  %v4367_v17 = vld [vmem:[%s5356_s4 + $0x128] sm:$0xff]  }
 0x5bb   : > { %4080 = vmatprep.subr.bf16.mxu0 %v4493_v0 }
 0x5be   : > { %4081 = vmatpush3.bf16.msra.mxu0 %v4354_v31  ;;  %v4378_v31 = vld [vmem:[%s5356_s4 + $0x170] sm:$0xff]  }
 0x5bf   : > { %4082 = vmatprep.subr.bf16.mxu0 %v4493_v0 }
 0x5c2   : > { %4083 = vmatpush3.bf16.msra.mxu0 %v4355_v32  ;;  %v4379_v32 = vld [vmem:[%s5356_s4 + $0x178] sm:$0xff]  }
 0x5c3   : > { %4104 = vmatprep.subr.bf16.mxu0 %v4493_v0 }
 0x645   : > { %v1699_v8 = vpop.xlane.xlu0 %1698 }
 0x646   : > { %v1701_v9 = vmul.f32 0.03125, %v1699_v8 }
 0x648   : > { %v1702_v12 = vsub.f32 %v1696_v60, %v1701_v9  ;;  %v4360_v9 = vld [vmem:[%s5356_s4 + $0xd0] sm:$0xff]  }
 0x64a   : > { %v1703_v13 = vmul.f32 %v1702_v12, %v1702_v12 }
 0x64c   : > { %v1704_v14 = vsel %vm442_vm3, %v1703_v13, 0.0 }
 0x64d   : > { %1705 = vadd.xlane.f32.xlu1 %v1704_v14  ;;  %v4363_v14 = vld [vmem:[%s5356_s4 + $0x108] sm:$0xff]  }
 0x6da   : > { %v1706_v18 = vpop.xlane.xlu1 %1705 }
 0x6db   : > { %v1707_v19 = vmul.f32 0.03125, %v1706_v18  ;;  %v4368_v18 = vld [vmem:[%s5356_s4 + $0x110] sm:$0xff]  }
 0x6dd   : > { %v1708_v20 = vadd.f32 1e-05, %v1707_v19  ;;  %v4369_v19 = vld [vmem:[%s5356_s4 + $0x140] sm:$0xff]  }
 0x6df   : > { %4404 = vrsqrt.f32 %v1708_v20  ;;  %v4370_v20 = vld [vmem:[%s5356_s4 + $0x118] sm:$0xff]  }
 0x6e9   : > { %v4405_v25 = vpop.eup %4404 }
 0x6ea   : > { %v1710_v26 = vmul.f32 %v4405_v25, %v1702_v12  ;;  %v4361_v12 = vld [vmem:[%s5356_s4 + $0x100] sm:$0xff]   ;;  %v4372_v25 = vld [vmem:[%s5356_s4 + $0x130] sm:$0xff]  }
 0x6ec   : > { %v1715_v28 = vmul.f32 %v1714_v24, %v1710_v26  ;;  %v4371_v24 = vld [vmem:[%s5356_s4 + $0x148] sm:$0xff]   ;;  %v4373_v26 = vld [vmem:[%s5356_s4 + $0x160] sm:$0xff]  }
 0x6ee   : > { %v1720_v29 = vadd.f32 %v1719_v27, %v1715_v28  ;;  %v4374_v27 = vld [vmem:[%s5356_s4 + $0x138] sm:$0xff]   ;;  %v4375_v28 = vld [vmem:[%s5356_s4 + $0x168] sm:$0xff]  }
 0x6f0   : > { %v1733_v30 = vpack.c.bf16 %v1720_v29, %v1720_v29 }
 0x6f2   : > { %4073 = vmatmul.mubr.msk.bf16.vlgmr.msra.gmra.mrb[48].mxu1 %vm442_vm3, %v1733_v30  ;;  %v4377_v30 = vld [vmem:[%s5356_s4 + $0x158] sm:$0xff]  }
 0x6f3   : > { %4092 = vmatprep.mubr.msk.bf16.mxu1 %vm4494_vm1, %v4493_v0  ;;  %4089 = vmatpush3.bf16.msra.mxu1 %v4356_v56  ;;  %v3668_v56 = vld [vmem:[%s5357_s5 + $0x90] sm:$0xff] }
 0x6f4   : > { %4090 = vmatprep.subr.bf16.mxu1 %v4493_v0 }
 0x6f7   : > { %4091 = vmatpush3.bf16.msra.mxu1 %v4358_v61 }
 0x6f8   : > { %4096 = vmatprep.subr.bf16.mxu1 %v4493_v0 }
 0x7c5   : > { %v1787_v35 = vpop.f32.mrb[48].mxu1 }
 0x7c6   : > { %v1788_v36 = vadd.f32 %v1787_v35, %v1737_v34  ;;  %v4074_v37 = vpop.f32.mrb[49].mxu1 }
 0x7c7   : > { %v1790_v38 = vpop.f32.mrb[50].mxu1 }
 0x7c8   : > { %v1793_v39 = vmax.f32 %v1788_v36, 0.0  ;;  %v4075_v40 = vpop.f32.mrb[51].mxu1 }
 0x7ca   : > { %v1794_v41 = vpack.c.bf16 %v1793_v39, %v1793_v39 }
 0x7cc   : > { %4085 = vmatmul.mubr.msk.bf16.vlgmr.msra.gmra.mrb[52].mxu0 %vm1823_vm6, %v1794_v41 }
 0x7cd   : > { %4108 = vmatprep.mubr.msk.bf16.mxu0 %vm4494_vm1, %v4493_v0  ;;  %4105 = vmatpush3.bf16.msra.mxu0 %v4357_v58 }
 0x7ce   : > { %4106 = vmatprep.subr.bf16.mxu0 %v4493_v0 }
 0x7d1   : > { %4107 = vmatpush3.bf16.msra.mxu0 %v4359_v62 }
 0x7d2   : > { %4120 = vmatprep.subr.bf16.mxu0 %v4493_v0 }
 0x89f   : > { %v1861_v44 = vpop.f32.mrb[52].mxu0 }
 0x8a0   : > { %v1862_v45 = vadd.f32 %v1861_v44, %v1798_v43  ;;  %v4086_v46 = vpop.f32.mrb[53].mxu0  ;;  %v3666_v43 = vld [vmem:[%s5357_s5 + $0x80] sm:$0xff] }
 0x8a1   : > { %v1864_v47 = vpop.f32.mrb[54].mxu0 }
 0x8a2   : > { %v4087_v48 = vpop.f32.mrb[55].mxu0  ;;  %v1867_v49 = vadd.f32 %v1862_v45, %v1720_v29  ;;  %v4376_v29 = vld [vmem:[%s5356_s4 + $0x150] sm:$0xff]  }
 0x8a4   : > { %v1868_v50 = vsel %vm442_vm3, %v1867_v49, 0.0 }
 0x8a5   : > { %1869 = vadd.xlane.f32.xlu0 %v1868_v50 }
 0x932   : > { %v1870_v51 = vpop.xlane.xlu0 %1869 }
 0x933   : > { %v1871_v52 = vmul.f32 0.03125, %v1870_v51 }
 0x935   : > { %v1872_v53 = vsub.f32 %v1867_v49, %v1871_v52 }
 0x937   : > { %v1873_v54 = vmul.f32 %v1872_v53, %v1872_v53 }
 0x939   : > { %v1874_v55 = vsel %vm442_vm3, %v1873_v54, 0.0  ;;  %v3662_v54 = vld [vmem:[%s5357_s5 + $0x60] sm:$0xff] }
 0x93a   : > { %1875 = vadd.xlane.f32.xlu1 %v1874_v55 }
 0x9c7   : > { %v1876_v63 = vpop.xlane.xlu1 %1875 }
 0x9c8   : > { %v1877_v1 = vmul.f32 0.03125, %v1876_v63 }
 0x9ca   : > { %v1878_v2 = vadd.f32 1e-05, %v1877_v1 }
 0x9cc   : > { %4406 = vrsqrt.f32 %v1878_v2 }
 0x9d6   : > { %v4407_v59 = vpop.eup %4406 }
 0x9d7   : > { %v1880_v60 = vmul.f32 %v4407_v59, %v1872_v53 }
 0x9d9   : > { %v1885_v7 = vmul.f32 %v1884_v5, %v1880_v60 }
 0x9db   : > { %v4977_v8 = vadd.f32 %v1889_v6, %v1885_v7 }
 0x9dd   : > { %v4987_v13 = vpack.c.bf16 %v4977_v8, %v4977_v8 }
 0x9df   : > { %4093 = vmatmul.mubr.msk.bf16.vlgmr.msra.gmra.mrb[52].mxu1 %vm442_vm3, %v4987_v13  ;;  %4109 = vmatmul.mubr.msk.bf16.vlgmr.msra.gmra.mrb[56].mxu0 %vm442_vm3, %v4987_v13 }
 0x9e0   : > { %4097 = vmatpush3.bf16.msra.mxu1 %v4360_v9  ;;  %4121 = vmatpush3.bf16.msra.mxu0 %v4361_v12  ;;  %v3664_v12 = vld [vmem:[%s5357_s5 + $0x70] sm:$0xff] }
 0x9e1   : > { %4098 = vmatprep.subr.bf16.mxu1 %v4493_v0  ;;  %4122 = vmatprep.subr.bf16.mxu0 %v4493_v0 }
 0x9e2   : > { %4100 = vmatprep.mubr.msk.bf16.mxu1 %vm4494_vm1, %v4493_v0  ;;  %4124 = vmatprep.mubr.msk.bf16.mxu0 %vm4494_vm1, %v4493_v0 }
 0x9e4   : > { %4099 = vmatpush3.bf16.msra.mxu1 %v4362_v57  ;;  %4123 = vmatpush3.bf16.msra.mxu0 %v4363_v14  ;;  %v3667_v57 = vld [vmem:[%s5357_s5 + $0x88] sm:$0xff]  ;;  %v3670_v14 = vld [vmem:[%s5357_s5 + $0xa0] sm:$0xff] }
 0x9e5   : > { %4112 = vmatprep.subr.bf16.mxu1 %v4493_v0  ;;  %4136 = vmatprep.subr.bf16.mxu0 %v4493_v0 }
 0x9e7   : > { %4101 = vmatmul.mubr.msk.bf16.vlgmr.msra.gmra.mrb[56].mxu1 %vm442_vm3, %v4987_v13  ;;  %4125 = vmatmul.mubr.msk.bf16.vlgmr.msra.gmra.mrb[60].mxu0 %vm442_vm3, %v4987_v13 }
 0x9e8   : > { %4113 = vmatpush3.bf16.msra.mxu1 %v4364_v15  ;;  %4137 = vmatpush3.bf16.msra.mxu0 %v4365_v16 }
 0x9e9   : > { %4114 = vmatprep.subr.bf16.mxu1 %v4493_v0  ;;  %4138 = vmatprep.subr.bf16.mxu0 %v4493_v0 }
 0x9ea   : > { %4116 = vmatprep.mubr.msk.bf16.mxu1 %vm4494_vm1, %v4493_v0  ;;  %4140 = vmatprep.mubr.msk.bf16.mxu0 %vm4494_vm1, %v4493_v0 }
 0x9ec   : > { %4115 = vmatpush3.bf16.msra.mxu1 %v4366_v21  ;;  %4139 = vmatpush3.bf16.msra.mxu0 %v4367_v17 }
 0x9ed   : > { %4128 = vmatprep.subr.bf16.mxu1 %v4493_v0  ;;  %4152 = vmatprep.subr.bf16.mxu0 %v4493_v0 }
 0x9ef   : > { %4117 = vmatmul.mubr.msk.bf16.vlgmr.msra.gmra.mrb[60].mxu1 %vm442_vm3, %v4987_v13  ;;  %4141 = vmatmul.mubr.msk.bf16.vlgmr.msra.gmra.mrb[64].mxu0 %vm442_vm3, %v4987_v13 }
 0x9f0   : > { %4129 = vmatpush3.bf16.msra.mxu1 %v4368_v18  ;;  %4153 = vmatpush3.bf16.msra.mxu0 %v4369_v19 }
 0x9f1   : > { %4130 = vmatprep.subr.bf16.mxu1 %v4493_v0  ;;  %4154 = vmatprep.subr.bf16.mxu0 %v4493_v0 }
 0x9f2   : > { %4132 = vmatprep.mubr.msk.bf16.mxu1 %vm4494_vm1, %v4493_v0  ;;  %4156 = vmatprep.mubr.msk.bf16.mxu0 %vm4494_vm1, %v4493_v0 }
 0x9f4   : > { %4131 = vmatpush3.bf16.msra.mxu1 %v4370_v20  ;;  %4155 = vmatpush3.bf16.msra.mxu0 %v4371_v24 }
 0x9f5   : > { %4144 = vmatprep.subr.bf16.mxu1 %v4493_v0  ;;  %4168 = vmatprep.subr.bf16.mxu0 %v4493_v0 }
 0x9f7   : > { %4133 = vmatmul.mubr.msk.bf16.vlgmr.msra.gmra.mrb[64].mxu1 %vm442_vm3, %v4987_v13  ;;  %4157 = vmatmul.mubr.msk.bf16.vlgmr.msra.gmra.mrb[68].mxu0 %vm442_vm3, %v4987_v13 }
 0x9f8   : > { %4145 = vmatpush3.bf16.msra.mxu1 %v4372_v25  ;;  %4169 = vmatpush3.bf16.msra.mxu0 %v4373_v26 }
 0x9f9   : > { %4146 = vmatprep.subr.bf16.mxu1 %v4493_v0  ;;  %4170 = vmatprep.subr.bf16.mxu0 %v4493_v0 }
 0x9fa   : > { %4148 = vmatprep.mubr.msk.bf16.mxu1 %vm4494_vm1, %v4493_v0  ;;  %4172 = vmatprep.mubr.msk.bf16.mxu0 %vm4494_vm1, %v4493_v0 }
 0x9fc   : > { %4147 = vmatpush3.bf16.msra.mxu1 %v4374_v27  ;;  %4171 = vmatpush3.bf16.msra.mxu0 %v4375_v28 }
 0x9fd   : > { %4160 = vmatprep.subr.bf16.mxu1 %v4493_v0  ;;  %4184 = vmatprep.subr.bf16.mxu0 %v4493_v0 }
 0x9ff   : > { %4149 = vmatmul.mubr.msk.bf16.vlgmr.msra.gmra.mrb[68].mxu1 %vm442_vm3, %v4987_v13  ;;  %4173 = vmatmul.mubr.msk.bf16.vlgmr.msra.gmra.mrb[72].mxu0 %vm442_vm3, %v4987_v13 }
 0xa00   : > { %4161 = vmatpush3.bf16.msra.mxu1 %v4376_v29  ;;  %4164 = vmatprep.mubr.msk.bf16.mxu1 %vm4494_vm1, %v4493_v0 }
 0xa01   : > { %4162 = vmatprep.subr.bf16.mxu1 %v4493_v0  ;;  %4186 = vmatprep.mubr.msk.bf16.mxu0 %vm4494_vm1, %v4493_v0 }
 0xa04   : > { %4163 = vmatpush3.bf16.msra.mxu1 %v4377_v30 }
 0xa05   : > { %4176 = vmatprep.subr.bf16.mxu1 %v4493_v0 }
 0xa07   : > { %4165 = vmatmul.mubr.msk.bf16.vlgmr.msra.gmra.mrb[72].mxu1 %vm442_vm3, %v4987_v13 }
 0xa08   : > { %4177 = vmatpush3.bf16.msra.mxu1 %v4378_v31  ;;  %4180 = vmatprep.mubr.msk.bf16.mxu1 %vm4494_vm1, %v4493_v0  ;;  %v3663_v31 = vld [vmem:[%s5357_s5 + $0x68] sm:$0xff] }
 0xa09   : > { %4178 = vmatprep.subr.bf16.mxu1 %v4493_v0 }
 0xa0c   : > { %4179 = vmatpush3.bf16.msra.mxu1 %v4379_v32 }
 0xa0d   : > { %4190 = vmatprep.subr.bf16.mxu1 %v4493_v0 }
 0xa0f   : > { %4181 = vmatmul.mubr.msk.bf16.vlgmr.msra.gmra.mrb[76].mxu1 %vm442_vm3, %v4987_v13 }
 0xa10   : > { %4192 = vmatprep.mubr.msk.bf16.mxu1 %vm4494_vm1, %v4493_v0 }
 0xab2   : > { %v2003_v34 = vpop.f32.mrb[52].mxu1  ;;  %v2107_v35 = vpop.f32.mrb[56].mxu0 }
 0xab3   : > { %v4094_v36 = vpop.f32.mrb[53].mxu1  ;;  %v4110_v37 = vpop.f32.mrb[57].mxu0  ;;  %v2004_v58 = vadd.f32 %v3662_v54, %v2003_v34  ;;  %v2108_v15 = vadd.f32 %v3664_v12, %v2107_v35  ;;  %v3669_v35 = vld [vmem:[%s5357_s5 + $0x98] sm:$0xff] }
 0xab4   : > { %v2006_v38 = vpop.f32.mrb[54].mxu1  ;;  %v2110_v39 = vpop.f32.mrb[58].mxu0 }
 0xab5   : > { %v4095_v40 = vpop.f32.mrb[55].mxu1  ;;  %v4111_v41 = vpop.f32.mrb[59].mxu0  ;;  %v2581_v6 = vpack.c.bf16 %v2004_v58, %v2004_v58  ;;  %v2583_v26 = vpack.c.bf16 %v2108_v15, %v2108_v15 }
 0xaba   : > { %v2055_v44 = vpop.f32.mrb[56].mxu1  ;;  %v2211_v45 = vpop.f32.mrb[60].mxu0 }
 0xabb   : > { %v2212_v46 = vadd.f32 %v3666_v43, %v2211_v45  ;;  %v4102_v47 = vpop.f32.mrb[57].mxu1  ;;  %v4126_v48 = vpop.f32.mrb[61].mxu0  ;;  %v2056_v36 = vadd.f32 %v3663_v31, %v2055_v44  ;;  %v3665_v44 = vld [vmem:[%s5357_s5 + $0x78] sm:$0xff] }
 0xabc   : > { %v2058_v49 = vpop.f32.mrb[58].mxu1  ;;  %v2214_v50 = vpop.f32.mrb[62].mxu0 }
 0xabd   : > { %v2585_v51 = vpack.c.bf16 %v2212_v46, %v2212_v46  ;;  %v4103_v52 = vpop.f32.mrb[59].mxu1  ;;  %v4127_v53 = vpop.f32.mrb[63].mxu0  ;;  %v2582_v46 = vpack.c.bf16 %v2056_v36, %v2056_v36 }
 0xabf   : > { %v2597_v55 = vsel %vm1070_vm4, %v2585_v51, 0  ;;  %v3671_v51 = vld [vmem:[%s5357_s5 + $0xa8] sm:$0xff] }
 0xac0   : > { %4185 = vmatpush3.bf16.xpose.msra.mxu0 %v2597_v55 }
 0xac1   : > { %4196 = vmatprep.subr.bf16.mxu0 %v4493_v0 }
 0xac2   : > { %v2159_v61 = vpop.f32.mrb[60].mxu1  ;;  %v2315_v62 = vpop.f32.mrb[64].mxu0 }
 0xac3   : > { %v2316_v63 = vadd.f32 %v3668_v56, %v2315_v62  ;;  %v4118_v1 = vpop.f32.mrb[61].mxu1  ;;  %v4142_v2 = vpop.f32.mrb[65].mxu0  ;;  %v2160_v52 = vadd.f32 %v3665_v44, %v2159_v61 }
 0xac4   : > { %v2162_v5 = vpop.f32.mrb[62].mxu1  ;;  %v2318_v59 = vpop.f32.mrb[66].mxu0 }
 0xac5   : > { %v2587_v60 = vpack.c.bf16 %v2316_v63, %v2316_v63  ;;  %v4119_v7 = vpop.f32.mrb[63].mxu1  ;;  %v4143_v9 = vpop.f32.mrb[67].mxu0  ;;  %v2584_v58 = vpack.c.bf16 %v2160_v52, %v2160_v52 }
 0xac7   : > { %v2689_v13 = vsel %vm1070_vm4, %v2587_v60, 0  ;;  %4187 = vmatmul.mubr.msk.bf16.vlgmr.msra.gmra.mrb[76].mxu0 %vm1070_vm4, %v2581_v6 }
 0xac8   : > { %4197 = vmatpush3.bf16.xpose.msra.mxu0 %v2689_v13  ;;  %4198 = vmatprep.mubr.msk.bf16.mxu0 %vm4494_vm1, %v4493_v0 }
 0xac9   : > { %4208 = vmatprep.subr.bf16.mxu0 %v4493_v0 }
 0xaca   : > { %v2263_v16 = vpop.f32.mrb[64].mxu1  ;;  %v2419_v21 = vpop.f32.mrb[68].mxu0 }
 0xacb   : > { %v2264_v17 = vadd.f32 %v3667_v57, %v2263_v16  ;;  %v2420_v18 = vadd.f32 %v3670_v14, %v2419_v21  ;;  %v4134_v19 = vpop.f32.mrb[65].mxu1  ;;  %v4158_v20 = vpop.f32.mrb[69].mxu0 }
 0xacc   : > { %v2266_v24 = vpop.f32.mrb[66].mxu1  ;;  %v2422_v25 = vpop.f32.mrb[70].mxu0 }
 0xacd   : > { %v2586_v27 = vpack.c.bf16 %v2264_v17, %v2264_v17  ;;  %v2589_v28 = vpack.c.bf16 %v2420_v18, %v2420_v18  ;;  %v4135_v29 = vpop.f32.mrb[67].mxu1  ;;  %v4159_v30 = vpop.f32.mrb[71].mxu0 }
 0xacf   : > { %v2643_v32 = vsel %vm1070_vm4, %v2586_v27, 0  ;;  %v2833_v34 = vsel %vm1310_vm5, %v2589_v28, 0  ;;  %4199 = vmatmul.mubr.msk.bf16.vlgmr.msra.gmra.mrb[80].mxu0 %vm1070_vm4, %v2583_v26 }
 0xad0   : > { %4191 = vmatpush3.bf16.xpose.msra.mxu1 %v2643_v32  ;;  %4209 = vmatpush3.bf16.msra.mxu0 %v2833_v34 }
 0xad1   : > { %4202 = vmatprep.subr.bf16.mxu1 %v4493_v0  ;;  %4210 = vmatprep.mubr.msk.bf16.mxu0 %vm4494_vm1, %v4493_v0 }
 0xad2   : > { %v2367_v37 = vpop.f32.mrb[68].mxu1  ;;  %v5148_v38 = vpop.f32.mrb[72].mxu0  ;;  %4220 = vmatprep.subr.bf16.mxu0 %v4493_v0 }
 0xad3   : > { %v2368_v39 = vadd.f32 %v3669_v35, %v2367_v37  ;;  %v4150_v40 = vpop.f32.mrb[69].mxu1  ;;  %v4174_v41 = vpop.f32.mrb[73].mxu0 }
 0xad4   : > { %v2370_v43 = vpop.f32.mrb[70].mxu1  ;;  %v2526_v45 = vpop.f32.mrb[74].mxu0 }
 0xad5   : > { %v2588_v47 = vpack.c.bf16 %v2368_v39, %v2368_v39  ;;  %v4151_v48 = vpop.f32.mrb[71].mxu1  ;;  %v4175_v49 = vpop.f32.mrb[75].mxu0 }
 0xad7   : > { %v2735_v50 = vsel %vm1070_vm4, %v2588_v47, 0  ;;  %4193 = vmatmul.mubr.msk.bf16.vlgmr.msra.gmra.mrb[80].mxu1 %vm1070_vm4, %v2582_v46 }
 0xad8   : > { %4203 = vmatpush3.bf16.xpose.msra.mxu1 %v2735_v50  ;;  %4204 = vmatprep.mubr.msk.bf16.mxu1 %vm4494_vm1, %v4493_v0 }
 0xad9   : > { %4214 = vmatprep.subr.bf16.mxu1 %v4493_v0 }
 0xada   : > { %v2471_v53 = vpop.f32.mrb[72].mxu1 }
 0xadb   : > { %v2472_v54 = vadd.f32 %v3671_v51, %v2471_v53  ;;  %v4166_v55 = vpop.f32.mrb[73].mxu1 }
 0xadc   : > { %v2474_v56 = vpop.f32.mrb[74].mxu1 }
 0xadd   : > { %v2590_v62 = vpack.c.bf16 %v2472_v54, %v2472_v54  ;;  %v4167_v63 = vpop.f32.mrb[75].mxu1 }
 0xadf   : > { %v2879_v1 = vsel %vm1310_vm5, %v2590_v62, 0  ;;  %4205 = vmatmul.mubr.msk.bf16.vlgmr.msra.gmra.mrb[84].mxu1 %vm1070_vm4, %v2584_v58  ;;  %v3672_v58 = vld [vmem:[%s5357_s5 + $0xb0] sm:$0xff] }
 0xae0   : > { %4215 = vmatpush3.bf16.msra.mxu1 %v2879_v1  ;;  %4216 = vmatprep.mubr.msk.bf16.mxu1 %vm4494_vm1, %v4493_v0  ;;  %v2524_v62 = vadd.f32 %v3672_v58, %v5148_v38 }
 0xae1   : > { %4226 = vmatprep.subr.bf16.mxu1 %v4493_v0 }
 0xae2   : > { %v5167_v61 = vpop.f32.mrb[76].mxu1 }
 0xae3   : > { %v4182_v2 = vpop.f32.mrb[77].mxu1 }
 0xae4   : > { %v2578_v5 = vpop.f32.mrb[78].mxu1  ;;  %v2591_v2 = vpack.c.bf16 %v2524_v62, %v2524_v62 }
 0xae5   : > { %v4183_v59 = vpop.f32.mrb[79].mxu1 }
 0xb9a   : > { %v2633_v6 = vpop.f32.mrb[76].mxu0 }
 0xb9b   : > { %v2777_v60 = vmul.f32 0.35355338, %v2633_v6  ;;  %v4188_v7 = vpop.f32.mrb[77].mxu0  ;;  %v2925_v6 = vsel %vm1310_vm5, %v2591_v2, 0 }
 0xb9c   : > { %v2636_v9 = vpop.f32.mrb[78].mxu0 }
 0xb9d   : > { %v4189_v12 = vpop.f32.mrb[79].mxu0  ;;  %v2781_v13 = vsel %vm1070_vm4, %v2777_v60, -inf  ;;  %v3673_v9 = vld [vmem:[%s5357_s5 + $0xb8] sm:$0xff] }
 0xb9e   : > { %2782 = vmax.xlane.f32.xlu0 %v2781_v13  ;;  %v2576_v13 = vadd.f32 %v3673_v9, %v5167_v61 }
 0xba2   : > { %v2725_v57 = vpop.f32.mrb[80].mxu0 }
 0xba3   : > { %v2779_v14 = vmul.f32 0.35355338, %v2725_v57  ;;  %v4200_v15 = vpop.f32.mrb[81].mxu0 }
 0xba4   : > { %v2728_v16 = vpop.f32.mrb[82].mxu0  ;;  %v2592_v15 = vpack.c.bf16 %v2576_v13, %v2576_v13 }
 0xba5   : > { %v4201_v21 = vpop.f32.mrb[83].mxu0  ;;  %v2787_v17 = vsel %vm1070_vm4, %v2779_v14, -inf }
 0xba6   : > { %2788 = vmax.xlane.f32.xlu0 %v2787_v17  ;;  %v2971_v17 = vsel %vm1310_vm5, %v2592_v15, 0 }
 0xbaa   : > { %v2679_v18 = vpop.f32.mrb[80].mxu1 }
 0xbab   : > { %v2778_v19 = vmul.f32 0.35355338, %v2679_v18  ;;  %v4194_v20 = vpop.f32.mrb[81].mxu1 }
 0xbac   : > { %v2682_v24 = vpop.f32.mrb[82].mxu1  ;;  %v3718_v20 = vld [vmem:[%s5358_s6 + $0x10] sm:$0xf] }
 0xbad   : > { %v4195_v25 = vpop.f32.mrb[83].mxu1  ;;  %v2784_v26 = vsel %vm1070_vm4, %v2778_v19, -inf  ;;  %v3026_v24 = vsel %vm1310_vm5, %v3718_v20, 0 }
 0xbae   : > { %2785 = vmax.xlane.f32.xlu1 %v2784_v26  ;;  %v3719_v25 = vld [vmem:[%s5358_s6 + $0x14] sm:$0xf] }
 0xbaf   : > { %v3072_v26 = vsel %vm1310_vm5, %v3719_v25, 0 }
 0xbb2   : > { %v2771_v27 = vpop.f32.mrb[84].mxu1 }
 0xbb3   : > { %v2780_v28 = vmul.f32 0.35355338, %v2771_v27  ;;  %v4206_v29 = vpop.f32.mrb[85].mxu1  ;;  %v3720_v27 = vld [vmem:[%s5358_s6 + $0x18] sm:$0xf] }
 0xbb4   : > { %v2774_v30 = vpop.f32.mrb[86].mxu1 }
 0xbb5   : > { %v4207_v31 = vpop.f32.mrb[87].mxu1  ;;  %v2790_v32 = vsel %vm1070_vm4, %v2780_v28, -inf }
 0xbb6   : > { %2791 = vmax.xlane.f32.xlu1 %v2790_v32  ;;  %v3118_v31 = vsel %vm1310_vm5, %v3720_v27, 0 }
 0xc2b   : > { %v2783_v34 = vpop.xlane.xlu0 %2782 }
 0xc2c   : > { %v2793_v35 = vsub.f32 %v2777_v60, %v2783_v34 }
 0xc2e   : > { %v2797_v36 = vmul.f32 1.442695, %v2793_v35 }
 0xc30   : > { %4408 = vpow2.f32 %v2797_v36 }
 0xc33   : > { %v2789_v37 = vpop.xlane.xlu0 %2788 }
 0xc34   : > { %v2795_v39 = vsub.f32 %v2779_v14, %v2789_v37 }
 0xc36   : > { %v2801_v40 = vmul.f32 1.442695, %v2795_v39 }
 0xc38   : > { %4410 = vpow2.f32 %v2801_v40 }
 0xc3a   : > { %v4409_v41 = vpop.eup %4408 }
 0xc3b   : > { %v2786_v43 = vpop.xlane.xlu1 %2785  ;;  %v2805_v45 = vsel %vm1070_vm4, %v4409_v41, 0.0 }
 0xc3c   : > { %v2794_v46 = vsub.f32 %v2778_v19, %v2786_v43  ;;  %2806 = vadd.xlane.f32.xlu0 %v2805_v45 }
 0xc3e   : > { %v2799_v47 = vmul.f32 1.442695, %v2794_v46 }
 0xc40   : > { %4412 = vpow2.f32 %v2799_v47 }
 0xc42   : > { %v4411_v48 = vpop.eup %4410 }
 0xc43   : > { %v2792_v49 = vpop.xlane.xlu1 %2791  ;;  %v2811_v44 = vsel %vm1070_vm4, %v4411_v48, 0.0 }
 0xc44   : > { %v2796_v50 = vsub.f32 %v2780_v28, %v2792_v49  ;;  %2812 = vadd.xlane.f32.xlu0 %v2811_v44 }
 0xc46   : > { %v2803_v51 = vmul.f32 1.442695, %v2796_v50 }
 0xc48   : > { %4414 = vpow2.f32 %v2803_v51 }
 0xc4a   : > { %v4413_v52 = vpop.eup %4412 }
 0xc4b   : > { %v2808_v53 = vsel %vm1070_vm4, %v4413_v52, 0.0 }
 0xc4c   : > { %2809 = vadd.xlane.f32.xlu1 %v2808_v53 }
 0xc52   : > { %v4415_v54 = vpop.eup %4414 }
 0xc53   : > { %v2814_v55 = vsel %vm1070_vm4, %v4415_v54, 0.0 }
 0xc54   : > { %2815 = vadd.xlane.f32.xlu1 %v2814_v55 }
 0xcc9   : > { %v2807_v56 = vpop.xlane.xlu0 %2806 }
 0xcca   : > { %4416 = vrcp.f32 %v2807_v56 }
 0xcd1   : > { %v2813_v63 = vpop.xlane.xlu0 %2812 }
 0xcd2   : > { %4418 = vrcp.f32 %v2813_v63 }
 0xcd4   : > { %v4417_v1 = vpop.eup %4416 }
 0xcd5   : > { %v2821_v5 = vmul.f32 %v4417_v1, %v4409_v41  ;;  %v3721_v41 = vld [vmem:[%s5358_s6 + $0x1c] sm:$0xf] }
 0xcd6   : > { %v3164_v47 = vsel %vm1310_vm5, %v3721_v41, 0 }
 0xcd7   : > { %v2825_v59 = vpack.c.bf16 %v2821_v5, %v2821_v5 }
 0xcd9   : > { %v2810_v60 = vpop.xlane.xlu1 %2809  ;;  %4211 = vmatmul.mubr.msk.bf16.vlgmr.msra.gmra.mrb[84].mxu0 %vm1070_vm4, %v2825_v59 }
 0xcda   : > { %4420 = vrcp.f32 %v2810_v60  ;;  %4221 = vmatpush3.bf16.msra.mxu0 %v2925_v6  ;;  %4222 = vmatprep.mubr.msk.bf16.mxu0 %vm4494_vm1, %v4493_v0 }
 0xcdb   : > { %4232 = vmatprep.subr.bf16.mxu0 %v4493_v0 }
 0xcdc   : > { %v4419_v7 = vpop.eup %4418 }
 0xcdd   : > { %v2823_v38 = vmul.f32 %v4419_v7, %v4411_v48 }
 0xcdf   : > { %v2827_v12 = vpack.c.bf16 %v2823_v38, %v2823_v38 }
 0xce1   : > { %v2816_v57 = vpop.xlane.xlu1 %2815  ;;  %4223 = vmatmul.mubr.msk.bf16.vlgmr.msra.gmra.mrb[88].mxu0 %vm1070_vm4, %v2827_v12 }
 0xce2   : > { %4422 = vrcp.f32 %v2816_v57  ;;  %4234 = vmatprep.mubr.msk.bf16.mxu0 %vm4494_vm1, %v4493_v0  ;;  %4233 = vmatpush3.bf16.msra.mxu0 %v3026_v24  ;;  %v5239_v57 = vld [vmem:[%s5353_s1 + $0x18] sm:$0xff] }
 0xce3   : > { %4244 = vmatprep.subr.bf16.mxu0 %v4493_v0  ;;  %v3216_v15 = vrot.slane %v5239_v57, %v4625_v11  ;;  %v4380_v11 = vld [vmem:[%s5359_s7 + $0x40] sm:$0xff]  }
 0xce4   : > { %v4421_v14 = vpop.eup %4420 }
 0xce5   : > { %v2822_v16 = vmul.f32 %v4421_v14, %v4413_v52 }
 0xce7   : > { %v2826_v21 = vpack.c.bf16 %v2822_v16, %v2822_v16 }
 0xce9   : > { %4217 = vmatmul.mubr.msk.bf16.vlgmr.msra.gmra.mrb[88].mxu1 %vm1070_vm4, %v2826_v21 }
 0xcea   : > { %4227 = vmatpush3.bf16.msra.mxu1 %v2971_v17  ;;  %4228 = vmatprep.mubr.msk.bf16.mxu1 %vm4494_vm1, %v4493_v0 }
 0xceb   : > { %4238 = vmatprep.subr.bf16.mxu1 %v4493_v0 }
 0xcec   : > { %v4423_v61 = vpop.eup %4422 }
 0xced   : > { %v2824_v18 = vmul.f32 %v4423_v61, %v4415_v54 }
 0xcef   : > { %v2828_v19 = vpack.c.bf16 %v2824_v18, %v2824_v18 }
 0xcf1   : > { %4229 = vmatmul.mubr.msk.bf16.vlgmr.msra.gmra.mrb[92].mxu1 %vm1070_vm4, %v2828_v19 }
 0xcf2   : > { %4240 = vmatprep.mubr.msk.bf16.mxu1 %vm4494_vm1, %v4493_v0  ;;  %4239 = vmatpush3.bf16.msra.mxu1 %v3072_v26 }
 0xcf3   : > { %4250 = vmatprep.subr.bf16.mxu1 %v4493_v0 }
 0xdac   : > { %v2869_v28 = vpop.f32.mrb[84].mxu0 }
 0xdad   : > { %v3013_v29 = vpack.c.bf16 %v2869_v28, %v2869_v28  ;;  %v4212_v30 = vpop.f32.mrb[85].mxu0 }
 0xdae   : > { %v2872_v32 = vpop.f32.mrb[86].mxu0  ;;  %v4381_v30 = vld [vmem:[%s5359_s7 + $0x48] sm:$0xff]  }
 0xdaf   : > { %v4213_v34 = vpop.f32.mrb[87].mxu0  ;;  %4235 = vmatmul.mubr.msk.bf16.vlgmr.msra.gmra.mrb[92].mxu0 %vm1070_vm4, %v3013_v29 }
 0xdb0   : > { %4245 = vmatpush3.bf16.msra.mxu0 %v3118_v31  ;;  %4246 = vmatprep.mubr.msk.bf16.mxu0 %vm4494_vm1, %v4493_v0  ;;  %v4383_v31 = vld [vmem:[%s5359_s7 + $0x68] sm:$0xff]  }
 0xdb1   : > { %4256 = vmatprep.subr.bf16.mxu0 %v4493_v0 }
 0xdb4   : > { %v2961_v35 = vpop.f32.mrb[88].mxu0 }
 0xdb5   : > { %v3015_v36 = vpack.c.bf16 %v2961_v35, %v2961_v35  ;;  %v4224_v37 = vpop.f32.mrb[89].mxu0 }
 0xdb6   : > { %v2964_v39 = vpop.f32.mrb[90].mxu0 }
 0xdb7   : > { %v4225_v40 = vpop.f32.mrb[91].mxu0  ;;  %4247 = vmatmul.mubr.msk.bf16.vlgmr.msra.gmra.mrb[96].mxu0 %vm1070_vm4, %v3015_v36  ;;  %v3235_v36 = vrot.slane %v5239_v57, %v4921_v22 }
 0xdb8   : > { %4260 = vmatprep.mubr.msk.bf16.mxu0 %vm4494_vm1, %v4493_v0  ;;  %4257 = vmatpush3.bf16.msra.mxu0 %v4380_v11  ;;  %v3240_v40 = vrot.slane %v5239_v57, %v1718_v23  ;;  %v3259_v23 = vrot.slane %v5239_v57, %v1736_v33 }
 0xdb9   : > { %4258 = vmatprep.subr.bf16.mxu0 %v4493_v0 }
 0xdbc   : > { %v2915_v43 = vpop.f32.mrb[88].mxu1  ;;  %4259 = vmatpush3.bf16.msra.mxu0 %v4381_v30 }
 0xdbd   : > { %v3014_v45 = vpack.c.bf16 %v2915_v43, %v2915_v43  ;;  %v4218_v46 = vpop.f32.mrb[89].mxu1  ;;  %4276 = vmatprep.subr.bf16.mxu0 %v4493_v0 }
 0xdbe   : > { %v2918_v48 = vpop.f32.mrb[90].mxu1  ;;  %v4384_v46 = vld [vmem:[%s5359_s7 + $0x70] sm:$0xff]  }
 0xdbf   : > { %v4219_v49 = vpop.f32.mrb[91].mxu1  ;;  %4241 = vmatmul.mubr.msk.bf16.vlgmr.msra.gmra.mrb[96].mxu1 %vm1070_vm4, %v3014_v45 }
 0xdc0   : > { %4251 = vmatpush3.bf16.msra.mxu1 %v3164_v47  ;;  %4252 = vmatprep.mubr.msk.bf16.mxu1 %vm4494_vm1, %v4493_v0  ;;  %v4385_v47 = vld [vmem:[%s5359_s7 + $0x78] sm:$0xff]  }
 0xdc1   : > { %4264 = vmatprep.subr.bf16.mxu1 %v4493_v0 }
 0xdc4   : > { %v3007_v44 = vpop.f32.mrb[92].mxu1 }
 0xdc5   : > { %v3016_v50 = vpack.c.bf16 %v3007_v44, %v3007_v44  ;;  %v4230_v51 = vpop.f32.mrb[93].mxu1 }
 0xdc6   : > { %v3010_v52 = vpop.f32.mrb[94].mxu1 }
 0xdc7   : > { %v4231_v53 = vpop.f32.mrb[95].mxu1  ;;  %4253 = vmatmul.mubr.msk.bf16.vlgmr.msra.gmra.mrb[100].mxu1 %vm1070_vm4, %v3016_v50 }
 0xdc8   : > { %4272 = vmatprep.mubr.msk.bf16.mxu1 %vm4494_vm1, %v4493_v0 }
 0xe82   : > { %v3062_v54 = vpop.f32.mrb[92].mxu0 }
 0xe83   : > { %v4236_v55 = vpop.f32.mrb[93].mxu0  ;;  %v3206_v59 = vsel %vm442_vm3, %v3062_v54, 0.0  ;;  %v3320_v54 = vrot.slane %v5239_v57, %v1797_v42  ;;  %v4386_v42 = vld [vmem:[%s5355_s3] sm:$0xff]  }
 0xe84   : > { %v3065_v56 = vpop.f32.mrb[94].mxu0 }
 0xe85   : > { %v4237_v58 = vpop.f32.mrb[95].mxu0 }
 0xe8a   : > { %v3154_v62 = vpop.f32.mrb[96].mxu0 }
 0xe8b   : > { %v4248_v63 = vpop.f32.mrb[97].mxu0  ;;  %v3209_v9 = vsel %vm442_vm3, %v3154_v62, 0.0 }
 0xe8c   : > { %v3157_v1 = vpop.f32.mrb[98].mxu0 }
 0xe8d   : > { %v4249_v2 = vpop.f32.mrb[99].mxu0 }
 0xe92   : > { %v3108_v5 = vpop.f32.mrb[96].mxu1 }
 0xe93   : > { %v3207_v6 = vsel %vm442_vm3, %v3108_v5, 0.0  ;;  %v4242_v60 = vpop.f32.mrb[97].mxu1 }
 0xe94   : > { %v3208_v7 = vadd.f32 %v3207_v6, %v3206_v59  ;;  %v3111_v38 = vpop.f32.mrb[98].mxu1 }
 0xe95   : > { %v4243_v12 = vpop.f32.mrb[99].mxu1 }
 0xe96   : > { %v3210_v13 = vadd.f32 %v3209_v9, %v3208_v7  ;;  %v4387_v7 = vld [vmem:[%s5355_s3 + $0x8] sm:$0xff]  }
 0xe9a   : > { %v3200_v14 = vpop.f32.mrb[100].mxu1 }
 0xe9b   : > { %v3211_v16 = vsel %vm442_vm3, %v3200_v14, 0.0  ;;  %v4254_v21 = vpop.f32.mrb[101].mxu1 }
 0xe9c   : > { %v3212_v17 = vadd.f32 %v3211_v16, %v3210_v13  ;;  %v3203_v61 = vpop.f32.mrb[102].mxu1  ;;  %v3405_v13 = vrot.slane %v5239_v57, %v1883_v3  ;;  %v3410_v16 = vrot.slane %v5239_v57, %v1888_v4 }
 0xe9d   : > { %v4255_v18 = vpop.f32.mrb[103].mxu1 }
 0xe9e   : > { %v3217_v19 = vadd.f32 %v3216_v15, %v3212_v17 }
 0xea0   : > { %v3218_v20 = vadd.f32 %v3217_v19, %v4977_v8  ;;  %v4382_v8 = vld [vmem:[%s5359_s7 + $0x60] sm:$0xff]  }
 0xea1   : > { %4265 = vmatpush3.bf16.msra.mxu1 %v4382_v8 }
 0xea2   : > { %v3219_v24 = vsel %vm442_vm3, %v3218_v20, 0.0  ;;  %4266 = vmatprep.subr.bf16.mxu1 %v4493_v0 }
 0xea3   : > { %3220 = vadd.xlane.f32.xlu0 %v3219_v24 }
 0xea5   : > { %4267 = vmatpush3.bf16.msra.mxu1 %v4383_v31 }
 0xea6   : > { %4268 = vmatprep.subr.bf16.mxu1 %v4493_v0 }
 0xea9   : > { %4269 = vmatpush3.bf16.msra.mxu1 %v4384_v46 }
 0xeaa   : > { %4270 = vmatprep.subr.bf16.mxu1 %v4493_v0 }
 0xead   : > { %4271 = vmatpush3.bf16.msra.mxu1 %v4385_v47 }
 0xf30   : > { %v3221_v25 = vpop.xlane.xlu0 %3220 }
 0xf31   : > { %v3222_v26 = vmul.f32 0.03125, %v3221_v25 }
 0xf33   : > { %v3223_v27 = vsub.f32 %v3218_v20, %v3222_v26 }
 0xf35   : > { %v3224_v28 = vmul.f32 %v3223_v27, %v3223_v27 }
 0xf37   : > { %v3225_v29 = vsel %vm442_vm3, %v3224_v28, 0.0 }
 0xf38   : > { %3226 = vadd.xlane.f32.xlu1 %v3225_v29 }
 0xfc5   : > { %v3227_v32 = vpop.xlane.xlu1 %3226 }
 0xfc6   : > { %v3228_v34 = vmul.f32 0.03125, %v3227_v32 }
 0xfc8   : > { %v3229_v35 = vadd.f32 1e-05, %v3228_v34 }
 0xfca   : > { %4424 = vrsqrt.f32 %v3229_v35 }
 0xfd4   : > { %v4425_v37 = vpop.eup %4424 }
 0xfd5   : > { %v3231_v39 = vmul.f32 %v4425_v37, %v3223_v27 }
 0xfd7   : > { %v3236_v41 = vmul.f32 %v3235_v36, %v3231_v39 }
 0xfd9   : > { %v3241_v43 = vadd.f32 %v3240_v40, %v3236_v41 }
 0xfdb   : > { %v3255_v45 = vpack.c.bf16 %v3241_v43, %v3241_v43 }
 0xfdd   : > { %4261 = vmatmul.mubr.msk.bf16.vlgmr.msra.gmra.mrb[100].mxu0 %vm442_vm3, %v3255_v45 }
 0xfde   : > { %4280 = vmatprep.mubr.msk.bf16.mxu0 %vm4494_vm1, %v4493_v0  ;;  %4277 = vmatpush3.bf16.msra.mxu0 %v4386_v42 }
 0xfdf   : > { %4278 = vmatprep.subr.bf16.mxu0 %v4493_v0  ;;  %v4428_v0 = vld [vmem:[%s5353_s1] sm:$0xff] }
 0xfe0   : > { %v3420_v3 = vrot.slane %v4428_v0, %v4921_v22 }
 0xfe2   : > { %4279 = vmatpush3.bf16.msra.mxu0 %v4387_v7 }
0x10b0   : > { %v3309_v48 = vpop.f32.mrb[100].mxu0 }
0x10b1   : > { %v3310_v49 = vadd.f32 %v3309_v48, %v3259_v23  ;;  %v4262_v44 = vpop.f32.mrb[101].mxu0 }
0x10b2   : > { %v3312_v50 = vpop.f32.mrb[102].mxu0 }
0x10b3   : > { %v3315_v51 = vmax.f32 %v3310_v49, 0.0  ;;  %v4263_v52 = vpop.f32.mrb[103].mxu0 }
0x10b5   : > { %v3316_v53 = vpack.c.bf16 %v3315_v51, %v3315_v51 }
0x10b7   : > { %4273 = vmatmul.mubr.msk.bf16.vlgmr.msra.gmra.mrb[104].mxu1 %vm1823_vm6, %v3316_v53 }
0x118a   : > { %v3382_v55 = vpop.f32.mrb[104].mxu1 }
0x118b   : > { %v3383_v56 = vadd.f32 %v3382_v55, %v3320_v54  ;;  %v4274_v58 = vpop.f32.mrb[105].mxu1 }
0x118c   : > { %v3385_v62 = vpop.f32.mrb[106].mxu1 }
0x118d   : > { %v4275_v63 = vpop.f32.mrb[107].mxu1  ;;  %v3388_v1 = vadd.f32 %v3383_v56, %v3241_v43 }
0x118f   : > { %v3389_v33 = vsel %vm442_vm3, %v3388_v1, 0.0 }
0x1190   : > { %3390 = vadd.xlane.f32.xlu0 %v3389_v33 }
0x121d   : > { %v3391_v2 = vpop.xlane.xlu0 %3390 }
0x121e   : > { %v3392_v5 = vmul.f32 0.03125, %v3391_v2 }
0x1220   : > { %v3393_v59 = vsub.f32 %v3388_v1, %v3392_v5 }
0x1222   : > { %v3394_v6 = vmul.f32 %v3393_v59, %v3393_v59 }
0x1224   : > { %v3395_v60 = vsel %vm442_vm3, %v3394_v6, 0.0 }
0x1225   : > { %3396 = vadd.xlane.f32.xlu1 %v3395_v60 }
0x12b2   : > { %v3397_v38 = vpop.xlane.xlu1 %3396 }
0x12b3   : > { %v3398_v9 = vmul.f32 0.03125, %v3397_v38 }
0x12b5   : > { %v3399_v12 = vadd.f32 1e-05, %v3398_v9 }
0x12b7   : > { %4426 = vrsqrt.f32 %v3399_v12 }
0x12c1   : > { %v4427_v14 = vpop.eup %4426 }
0x12c2   : > { %v3401_v15 = vmul.f32 %v4427_v14, %v3393_v59 }
0x12c4   : > { %v3406_v21 = vmul.f32 %v3405_v13, %v3401_v15 }
0x12c6   : > { %v3411_v17 = vadd.f32 %v3410_v16, %v3406_v21 }
0x12c8   : > { %v3412_v61 = vpack.c.bf16 %v3411_v17, %v3411_v17 }
0x12ca   : > { %4281 = vmatmul.mubr.msk.bf16.vlgmr.msra.gmra.mrb[104].mxu0 %vm442_vm3, %v3412_v61 }
0x139d   : > { %v3470_v10 = vpop.f32.mrb[104].mxu0 }
0x139e   : > { %v3471_v18 = vadd.f32 %v3470_v10, %v3420_v3  ;;  %v4282_v4 = vpop.f32.mrb[105].mxu0 }
0x139f   : > { %v3473_v57 = vpop.f32.mrb[106].mxu0 }
0x13a0   : > { %3476 = vst [vmem:[%s296_s17] sm:$0xff] %v3471_v18  ;;  %v4283_v19 = vpop.f32.mrb[107].mxu0 }
0x13a1   : > { %4442 = shalt.err (!%p4439_p3)
}
0x13a2   : > { %s4443_s25 = scalar_lea.hbm %s5310_s21, 128  ;;  %s4447_s13 = scalar_lea.hbm %s5360_s8, 256 }
0x13a3   : > { %p4444_p4 = scmp.ne.s32.totalorder %s5310_s21, %s4443_s25  ;;  %p4448_p9 = scmp.lt.u32.totalorder %s5310_s21, %s5360_s8 }
0x13a4   : > { %p4449_p10 = scmp.lt.u32.totalorder %s4447_s13, %s4443_s25  ;;  %p4451_p12 = scmp.lt.u32.totalorder %s4443_s25, %s5310_s21 }
0x13a5   : > { %p4445_p7 = pnand %p4444_p4, %p4579_p5 }
0x13a6   : > { %p4450_p11 = por %p4449_p10, %p4448_p9 }
0x13a7   : > { %p4446_p8 = pneg %p4445_p7 }
0x13a8   : > { %p4452_p13 = por %p4451_p12, %p4450_p11 }
0x13aa   : > { %p4453_p0 = pnand %p4452_p13, %p4446_p8 }
0x13ac   : > { %4456 = shalt.err (!%p4453_p0)
}
0x13ad   : > { %4284 = dma.vmem_to_hbm [thread:$0]  (%p4579_p5), %s5312_s18, 128, %s5310_s21, %s3478_s22  }
0x13ae PF: > { %p4290_p1 = scmp.ge.s32.totalorder %s4491_s30, 2  ;;  %s3503_s20 = sand.u32 1, %s4479_s27  }
0x13af   : > { %s3504_s9 = scalar_lea.sflag [#allocation3], %s3503_s20 }
0x13b0   : > { %p4287_p2 = pnand %p4290_p1, %p4583_p6 }
0x13b2   : > { %4474 = dma.done.wait (!%p4287_p2), %s3504_s9, 128  }
0x13b3   : > { %4476 = vsyncadd (!%p4287_p2), %s3504_s9, 4294967168  ;;  %p18_p3 = scmp.ge.s32.totalorder %s4566_s11, 4   ;;  %s5363_s27 = smov %s4483_s28 }
0x13b4   : > { %s5364_s28 = smov %s4487_s29  ;;  %s5365_s29 = smov %s4577_s14 }
0x13b5   : > { %s5366_s30 = smov %s4566_s11  ;;  %20 = sbr.rel (!%p18_p3) target bundleno = 3 (0x3), region = 91 }
0x13bc   :  { %3509 = vsyncpa [#allocation3], 1 }
0x13bd   :  { %3511 = vsyncpa [#allocation3 + $0x1], 1 }

</bundles_post_ra>
